<compile_context>
chip_gen: v5e
topology: v5e:2x2
jax: 0.10.0
libtpu: 0.0.40
codegen_flags: <defaults>
</compile_context>

<pallas_src>
import functools

import jax
import jax.numpy as jnp
from jax.experimental import pallas as pl
from jax.experimental.pallas import tpu as pltpu

LN_EPS = 1e-5
LANE = 128

LAYER_KEYS = (
    "ln1_g", "ln1_b",          # PreNorm LayerNorm(dim)
    "w_in", "b_in",            # fused proj_in Linear(dim, dim_ff) = [res||gate]
    "lng_g", "lng_b",          # SGU LayerNorm(dim_ff//2)
    "sgu_w", "sgu_b",          # SGU spatial weight (N,N) / bias (N,1) (heads=1)
    "w_out", "b_out",          # proj_out Linear(dim_ff//2, dim)
)


def _round_up(x, m):
    return (x + m - 1) // m * m


def _gelu(x):
    # exact (erf-based) GELU, matching torch.nn.GELU() default
    return 0.5 * x * (1.0 + jax.lax.erf(x * (2.0 ** -0.5)))


def _layernorm(x, g, b):
    mu = jnp.mean(x, axis=-1, keepdims=True)
    var = jnp.mean((x - mu) ** 2, axis=-1, keepdims=True)
    return (x - mu) * jax.lax.rsqrt(var + LN_EPS) * g + b


def _layernorm_padded(x, g, b, n_real):
    # LayerNorm over the last axis when only the first n_real lanes hold real
    # data and the remaining (padded) lanes are exactly zero.  Two-pass
    # (centered) variance: padded lanes each contribute mu^2 to sum((x-mu)^2),
    # which is subtracted back out.  g/b are zero in the padded lanes, so the
    # padded region stays exactly zero on output.
    n_total = x.shape[-1]
    mu = jnp.sum(x, axis=-1, keepdims=True) / n_real
    d = x - mu
    var = (jnp.sum(d * d, axis=-1, keepdims=True)
           - (n_total - n_real) * mu * mu) / n_real
    return d * jax.lax.rsqrt(var + LN_EPS) * g + b


# ------------------------------ kernels ------------------------------------ #

def _gmlp_stack_kernel(d_real, fh_real,
                       tok_ref, emb_w, emb_b,
                       ln1_g, ln1_b, w_in, b_in, lng_g, lng_b,
                       sgu_w, sgu_b, w_out, b_out, o_ref):
    # grid = (batch_blocks, depth); the activation lives in o_ref (VMEM
    # resident across the depth axis -> no per-layer HBM round-trip).
    d = pl.program_id(1)
    bt, n, dp = o_ref.shape
    fhp = lng_g.shape[-1]

    @pl.when(d == 0)
    def _():
        # Fused patch embedding: (bt*N, Pp) bf16 @ (Pp, Dp) bf16 -> f32 + bias.
        t = tok_ref[...].reshape(bt * n, -1)
        o_ref[...] = (jnp.dot(t, emb_w[...],
                              preferred_element_type=jnp.float32)
                      + emb_b[...]).reshape(bt, n, dp)

    x = o_ref[...].reshape(bt * n, dp)                      # residual stream, f32
    xn = _layernorm_padded(x, ln1_g[0], ln1_b[0], d_real)   # PreNorm
    xw = xn.astype(jnp.bfloat16)

    # proj_in (Linear(dim, dim_ff)) as ONE fused matmul, then GELU; the split
    # at Fhp is lane-aligned (Fhp is a multiple of 128), so slicing is free.
    proj = jnp.dot(xw, w_in[0], preferred_element_type=jnp.float32) + b_in[0]
    res = _gelu(proj[:, :fhp]).astype(jnp.bfloat16).reshape(bt, n, fhp)
    gate = _gelu(proj[:, fhp:])

    # SpatialGatingUnit (heads=1, causal=False, act=Identity)
    gate = _layernorm_padded(gate, lng_g[0], lng_b[0], fh_real)
    gate3 = gate.reshape(bt, n, fhp).astype(jnp.bfloat16)
    w = sgu_w[0]                                            # (N, N) bf16
    bias = sgu_b[0]                                         # (N, 1) f32
    rows = []
    for b in range(bt):                                     # no broadcast_to of W
        g = jnp.dot(w, gate3[b], preferred_element_type=jnp.float32) + bias
        # g's padded Fhp lanes equal `bias`, but res is exactly zero there,
        # so the product keeps the padded lanes at zero.
        rows.append(g.astype(jnp.bfloat16) * res[b])
    hidden = jnp.concatenate(rows, axis=0)                  # (bt*N, Fhp) bf16

    y = jnp.dot(hidden, w_out[0], preferred_element_type=jnp.float32) + b_out[0]
    o_ref[...] = (x + y).reshape(bt, n, dp)                 # Residual


def _head_kernel(d_real, x_ref, ln_g, ln_b, w_ref, b_ref, o_ref):
    # x block: (bh, N, Dp) -> logits block (bh, NCp).  Mean pool over tokens is
    # a block-diagonal (bh, bh*N) x (bh*N, Dp) matmul on the MXU.
    bh, n, dp = x_ref.shape
    xn = _layernorm_padded(x_ref[...].reshape(bh * n, dp),
                           ln_g[...], ln_b[...], d_real)
    rows = jax.lax.broadcasted_iota(jnp.int32, (bh, bh * n), 0)
    cols = jax.lax.broadcasted_iota(jnp.int32, (bh, bh * n), 1)
    start = rows * n
    pool = jnp.where((cols >= start) & (cols < start + n),
                     1.0 / n, 0.0).astype(jnp.float32)
    pooled = jnp.dot(pool, xn, preferred_element_type=jnp.float32)   # (bh, Dp)
    o_ref[...] = (jnp.dot(pooled, w_ref[...],
                          preferred_element_type=jnp.float32) + b_ref[...])


# ------------------------------ wrapper ------------------------------------ #

def _choose_bt(batch, n_tokens, per_row_bytes, weight_bytes,
               budget=32 << 20, row_target=1024):
    """Largest divisor of `batch` whose working set fits `budget`, stopping
    once bt*N reaches `row_target` rows (enough arithmetic intensity to hide
    the per-layer weight stream on v6e; v5e needs less; v7x has less VMEM so
    the budget check binds first).  NOTE: prime batch sizes degrade to bt=1."""
    best = 1
    for bt in range(1, batch + 1):
        if batch % bt:
            continue
        if 2 * weight_bytes + bt * n_tokens * per_row_bytes <= budget:
            best = bt
        if bt * n_tokens >= row_target:
            break
    return best


def gmlp_vision_forward(x_img, q):
    B, C, H, W = x_img.shape
    ps = q["patch_size"]
    h, w = H // ps, W // ps
    N = q["num_patches"]
    assert N == h * w and N % 8 == 0
    D, Fh = q["dim"], q["ffh"]
    Dp, Fhp, NCp = q["dim_pad"], q["ffh_pad"], q["nc_pad"]
    NC = q["num_classes"]
    depth = q["depth"]
    P = C * ps * ps
    Pp = q["embed_w"].shape[0]

    # b c (h p1) (w p2) -> b (h w) (c p1 p2); pad the patch dim to a lane
    # multiple (zeros) and cast once to bf16 for the MXU.
    tok = x_img.reshape(B, C, h, ps, w, ps).transpose(0, 2, 4, 1, 3, 5)
    tok = tok.reshape(B, N, P).astype(jnp.bfloat16)
    tok = jnp.pad(tok, ((0, 0), (0, 0), (0, Pp - P)))

    # ---- all gMLP blocks (+ fused patch embedding) in a single kernel ------ #
    args = [q[k] for k in LAYER_KEYS]            # each stacked: (depth, ...)
    layer_block_bytes = sum(int(a[0].size) * a.dtype.itemsize for a in args)
    embed_bytes = (q["embed_w"].size * q["embed_w"].dtype.itemsize
                   + q["embed_b"].size * 4)
    per_row_bytes = (2 * Pp * 2                  # tok block (double-buffered)
                     + 2 * Dp * 4                # resident activation block
                     + 8 * max(2 * Fhp, Dp) * 4) # f32 intermediates headroom
    bt = _choose_bt(B, N, per_row_bytes, layer_block_bytes + embed_bytes)
    bb = B // bt

    est_vmem = (bt * N * per_row_bytes + 2 * layer_block_bytes + embed_bytes)
    vmem_limit = int(min(max(est_vmem, 32 << 20), 64 << 20))

    m_rows = bt * N
    flops_step = (2 * m_rows * Dp * (2 * Fhp)    # fused proj_in
                  + 2 * bt * N * N * Fhp         # spatial gating matmuls
                  + 2 * m_rows * Fhp * Dp)       # proj_out
    cost = pl.CostEstimate(
        flops=int(bb * depth * flops_step + 2 * B * N * Pp * Dp),
        transcendentals=int(bb * depth * 2 * m_rows * Fhp),
        bytes_accessed=int(B * N * Pp * 2 + B * N * Dp * 4
                           + bb * depth * layer_block_bytes
                           + bb * embed_bytes))

    in_specs = [
        pl.BlockSpec((bt, N, Pp), lambda b, d: (b, 0, 0)),      # tokens
        pl.BlockSpec((Pp, Dp), lambda b, d: (0, 0)),            # embed weight
        pl.BlockSpec((1, Dp), lambda b, d: (0, 0)),             # embed bias
    ] + [pl.BlockSpec((1,) + a.shape[1:], lambda b, d: (d, 0, 0)) for a in args]

    x = pl.pallas_call(
        functools.partial(_gmlp_stack_kernel, D, Fh),
        out_shape=jax.ShapeDtypeStruct((B, N, Dp), jnp.float32),
        grid=(bb, depth),
        in_specs=in_specs,
        out_specs=pl.BlockSpec((bt, N, Dp), lambda b, d: (b, 0, 0)),
        compiler_params=pltpu.CompilerParams(
            dimension_semantics=("parallel", "arbitrary"),
            vmem_limit_bytes=vmem_limit),
        cost_estimate=cost,
    )(tok, q["embed_w"], q["embed_b"], *args)

    # ---- head: LayerNorm -> mean pool -> Linear, batched over images -------- #
    bh = 1
    for cand in range(1, min(B, 16) + 1):
        if B % cand == 0:
            bh = cand
    logits = pl.pallas_call(
        functools.partial(_head_kernel, D),
        out_shape=jax.ShapeDtypeStruct((B, NCp), jnp.float32),
        grid=(B // bh,),
        in_specs=[pl.BlockSpec((bh, N, Dp), lambda i: (i, 0, 0)),
                  pl.BlockSpec((1, Dp), lambda i: (0, 0)),
                  pl.BlockSpec((1, Dp), lambda i: (0, 0)),
                  pl.BlockSpec((Dp, NCp), lambda i: (0, 0)),
                  pl.BlockSpec((1, NCp), lambda i: (0, 0))],
        out_specs=pl.BlockSpec((bh, NCp), lambda i: (i, 0)),
        compiler_params=pltpu.CompilerParams(
            dimension_semantics=("parallel",)),
    )(x, q["head_ln_g"], q["head_ln_b"], q["head_w"], q["head_b"])
    return logits[:, :NC]


# --------------------------- parameter packing ------------------------------ #

def pack_params(p):
    """Pad feature dims to LANE multiples (zeros), fuse proj_in weights, stack
    per-layer weights along a leading depth axis, cast matmul weights to bf16."""
    D = p["dim"]
    NC = p["num_classes"]
    Fh = p["layers"][0]["w_res"].shape[1]
    N = p["layers"][0]["sgu_w"].shape[0]
    P = p["embed_w"].shape[0]
    Dp, Fhp, NCp = _round_up(D, LANE), _round_up(Fh, LANE), _round_up(NC, LANE)
    Pp = _round_up(P, LANE)

    def padlast(a, to):
        return jnp.pad(a, [(0, 0)] * (a.ndim - 1) + [(0, to - a.shape[-1])])

    q = {
        "patch_size": p["patch_size"], "dim": D, "num_classes": NC,
        "ffh": Fh, "num_patches": N, "depth": len(p["layers"]),
        "dim_pad": Dp, "ffh_pad": Fhp, "nc_pad": NCp,
        "embed_w": padlast(jnp.pad(p["embed_w"], ((0, Pp - P), (0, 0))),
                           Dp).astype(jnp.bfloat16),
        "embed_b": padlast(p["embed_b"], Dp),
        "head_ln_g": padlast(p["head_ln_g"], Dp),
        "head_ln_b": padlast(p["head_ln_b"], Dp),
        # head matmul is tiny; keep it f32 for precision.
        "head_w": padlast(jnp.pad(p["head_w"], ((0, Dp - D), (0, 0))), NCp),
        "head_b": padlast(p["head_b"], NCp),
    }

    layers = p["layers"]

    def st(key):
        return jnp.stack([layer[key] for layer in layers], axis=0)

    q["ln1_g"] = padlast(st("ln1_g"), Dp)                         # (depth,1,Dp)
    q["ln1_b"] = padlast(st("ln1_b"), Dp)
    w_res = jnp.pad(st("w_res"), ((0, 0), (0, Dp - D), (0, Fhp - Fh)))
    w_gate = jnp.pad(st("w_gate"), ((0, 0), (0, Dp - D), (0, Fhp - Fh)))
    q["w_in"] = jnp.concatenate([w_res, w_gate], axis=-1).astype(jnp.bfloat16)
    q["b_in"] = jnp.concatenate([padlast(st("b_res"), Fhp),
                                 padlast(st("b_gate"), Fhp)], axis=-1)
    q["lng_g"] = padlast(st("lng_g"), Fhp)
    q["lng_b"] = padlast(st("lng_b"), Fhp)
    q["sgu_w"] = st("sgu_w").astype(jnp.bfloat16)                 # (depth,N,N)
    q["sgu_b"] = st("sgu_b")                                      # (depth,N,1)
    q["w_out"] = jnp.pad(st("w_out"),
                         ((0, 0), (0, Fhp - Fh), (0, Dp - D))).astype(jnp.bfloat16)
    q["b_out"] = padlast(st("b_out"), Dp)
    return q


# --------------------------- parameter init --------------------------------- #

def init_params(key, *, image_size, patch_size, num_classes, dim, depth,
                ff_mult, channels):
    # Deterministic synthetic weights (shapes follow the PyTorch module).
    N = (image_size // patch_size) ** 2
    P = channels * patch_size * patch_size
    F = dim * ff_mult
    Fh = F // 2

    keys = jax.random.split(key, 2 + depth)

    def nrm(k, shape, s=0.02):
        return jax.random.normal(k, shape, jnp.float32) * s

    params = {
        "patch_size": patch_size, "dim": dim, "num_classes": num_classes,
        "embed_w": nrm(keys[0], (P, dim)),
        "embed_b": jnp.zeros((1, dim), jnp.float32),
        "head_ln_g": jnp.ones((1, dim), jnp.float32),
        "head_ln_b": jnp.zeros((1, dim), jnp.float32),
        "head_w": nrm(keys[1], (dim, num_classes)),
        "head_b": jnp.zeros((1, num_classes), jnp.float32),
        "layers": [],
    }
    init_eps = 1e-3 / N
    for i in range(depth):
        k1, k2, k3, k4 = jax.random.split(keys[2 + i], 4)
        params["layers"].append({
            "ln1_g": jnp.ones((1, dim), jnp.float32),
            "ln1_b": jnp.zeros((1, dim), jnp.float32),
            "w_res": nrm(k1, (dim, Fh)),
            "b_res": jnp.zeros((1, Fh), jnp.float32),
            "w_gate": nrm(k2, (dim, Fh)),
            "b_gate": jnp.zeros((1, Fh), jnp.float32),
            "lng_g": jnp.ones((1, Fh), jnp.float32),
            "lng_b": jnp.zeros((1, Fh), jnp.float32),
            "sgu_w": jax.random.uniform(k3, (N, N), jnp.float32,
                                        -init_eps, init_eps),
            "sgu_b": jnp.ones((N, 1), jnp.float32),
            "w_out": nrm(k4, (Fh, dim)),
            "b_out": jnp.zeros((1, dim), jnp.float32),
        })
    return params


# ------------------------- pure-JAX reference -------------------------------- #

def reference_forward(x_img, p):
    hp = jax.lax.Precision.HIGHEST
    B, C, H, W = x_img.shape
    ps = p["patch_size"]
    h, w = H // ps, W // ps
    N = h * w
    tok = x_img.reshape(B, C, h, ps, w, ps).transpose(0, 2, 4, 1, 3, 5)
    tok = tok.reshape(B, N, -1).astype(jnp.float32)
    x = jnp.einsum("bnp,pd->bnd", tok, p["embed_w"], precision=hp) + p["embed_b"][0]
    for L in p["layers"]:
        xn = _layernorm(x, L["ln1_g"][0], L["ln1_b"][0])
        res = _gelu(jnp.einsum("bnd,df->bnf", xn, L["w_res"], precision=hp) + L["b_res"][0])
        gate = _gelu(jnp.einsum("bnd,df->bnf", xn, L["w_gate"], precision=hp) + L["b_gate"][0])
        gate = _layernorm(gate, L["lng_g"][0], L["lng_b"][0])
        gate = (jnp.einsum("mn,bnf->bmf", L["sgu_w"], gate, precision=hp)
                + L["sgu_b"][:, 0][None, :, None])
        hid = gate * res
        x = x + jnp.einsum("bnf,fd->bnd", hid, L["w_out"], precision=hp) + L["b_out"][0]
    xn = _layernorm(x, p["head_ln_g"][0], p["head_ln_b"][0])
    pooled = jnp.mean(xn, axis=1)
    return jnp.einsum("bd,dc->bc", pooled, p["head_w"], precision=hp) + p["head_b"][0]


# --------------------------------- main -------------------------------------- #

if __name__ == "__main__":
    key = jax.random.PRNGKey(0)
    kx, kp = jax.random.split(key)

    image_size, patch_size, channels = 16, 4, 3
    dim, depth, ff_mult, num_classes = 32, 2, 4, 10   # num_patches N = 16, dim_ff = 128

    x = jax.random.normal(kx, (2, channels, image_size, image_size), jnp.float32)
    raw_params = init_params(kp, image_size=image_size, patch_size=patch_size,
                             num_classes=num_classes, dim=dim, depth=depth,
                             ff_mult=ff_mult, channels=channels)
    packed_params = pack_params(raw_params)

    out = gmlp_vision_forward(x, packed_params)
    out = jax.block_until_ready(out)

    ref = reference_forward(x, raw_params)
    assert out.shape == (2, num_classes)
    # bf16 MXU inputs + bf16 gate*res product -> slightly looser tolerance.
    assert jnp.allclose(out, ref, rtol=2e-2, atol=5e-3), \
        float(jnp.max(jnp.abs(out - ref)))

    print("KERNEL_OK")
</pallas_src>

<mosaic_0001>
module attributes {stable_mosaic.version = 11 : i64} {
  func.func @_gmlp_stack_kernel(%arg0: i32, %arg1: i32, %arg2: memref<2x16x128xbf16, #tpu.memory_space<vmem>>, %arg3: memref<128x128xbf16, #tpu.memory_space<vmem>>, %arg4: memref<1x128xf32, #tpu.memory_space<vmem>>, %arg5: memref<1x1x128xf32, #tpu.memory_space<vmem>>, %arg6: memref<1x1x128xf32, #tpu.memory_space<vmem>>, %arg7: memref<1x128x256xbf16, #tpu.memory_space<vmem>>, %arg8: memref<1x1x256xf32, #tpu.memory_space<vmem>>, %arg9: memref<1x1x128xf32, #tpu.memory_space<vmem>>, %arg10: memref<1x1x128xf32, #tpu.memory_space<vmem>>, %arg11: memref<1x16x16xbf16, #tpu.memory_space<vmem>>, %arg12: memref<1x16x1xf32, #tpu.memory_space<vmem>>, %arg13: memref<1x128x128xbf16, #tpu.memory_space<vmem>>, %arg14: memref<1x1x128xf32, #tpu.memory_space<vmem>>, %arg15: memref<2x16x128xf32, #tpu.memory_space<vmem>>) attributes {dimension_semantics = [#tpu.dimension_semantics<parallel>, #tpu.dimension_semantics<arbitrary>], iteration_bounds = array<i64: 1, 2>, scalar_prefetch = 0 : i64, scratch_operands = 0 : i64, tpu.core_type = #tpu.core_type<tc>, window_params = [{transform_indices = @transform_0, window_bounds = array<i64: 2, 16, 128>}, {pipeline_mode = #tpu.pipeline_mode<synchronous>, transform_indices = @transform_1, window_bounds = array<i64: 128, 128>}, {pipeline_mode = #tpu.pipeline_mode<synchronous>, transform_indices = @transform_2, window_bounds = array<i64: 1, 128>}, {transform_indices = @transform_3, window_bounds = array<i64: 1, 1, 128>}, {transform_indices = @transform_4, window_bounds = array<i64: 1, 1, 128>}, {transform_indices = @transform_5, window_bounds = array<i64: 1, 128, 256>}, {transform_indices = @transform_6, window_bounds = array<i64: 1, 1, 256>}, {transform_indices = @transform_7, window_bounds = array<i64: 1, 1, 128>}, {transform_indices = @transform_8, window_bounds = array<i64: 1, 1, 128>}, {transform_indices = @transform_9, window_bounds = array<i64: 1, 16, 16>}, {transform_indices = @transform_10, window_bounds = array<i64: 1, 16, 1>}, {transform_indices = @transform_11, window_bounds = array<i64: 1, 128, 128>}, {transform_indices = @transform_12, window_bounds = array<i64: 1, 1, 128>}, {transform_indices = @transform_13, window_bounds = array<i64: 2, 16, 128>}]} {
    %c0_i32 = arith.constant 0 : i32
    %0 = arith.cmpi eq, %arg1, %c0_i32 : i32
    %1 = arith.extui %0 : i1 to i32
    %c0_i32_0 = arith.constant 0 : i32
    %2 = arith.cmpi ne, %1, %c0_i32_0 : i32
    scf.if %2 {
      %c0_57 = arith.constant 0 : index
      %c0_58 = arith.constant 0 : index
      %c0_59 = arith.constant 0 : index
      %124 = vector.load %arg2[%c0_57, %c0_58, %c0_59] : memref<2x16x128xbf16, #tpu.memory_space<vmem>>, vector<2x16x128xbf16>
      %125 = vector.shape_cast %124 : vector<2x16x128xbf16> to vector<32x128xbf16>
      %c0_60 = arith.constant 0 : index
      %c0_61 = arith.constant 0 : index
      %126 = vector.load %arg3[%c0_60, %c0_61] : memref<128x128xbf16, #tpu.memory_space<vmem>>, vector<128x128xbf16>
      %cst_62 = arith.constant dense<0.000000e+00> : vector<32x128xf32>
      %127 = tpu.matmul %125, %126, %cst_62 {dimension_numbers = #tpu.dot_dimension_numbers<[1], [0], [0], [1], [0, 0, 1, 1], [], []>} : vector<32x128xbf16>, vector<128x128xbf16>, vector<32x128xf32> -> vector<32x128xf32>
      %c0_63 = arith.constant 0 : index
      %c0_64 = arith.constant 0 : index
      %128 = vector.load %arg4[%c0_63, %c0_64] : memref<1x128xf32, #tpu.memory_space<vmem>>, vector<1x128xf32>
      %129 = vector.broadcast %128 : vector<1x128xf32> to vector<32x128xf32>
      %130 = arith.addf %127, %129 : vector<32x128xf32>
      %131 = vector.shape_cast %130 : vector<32x128xf32> to vector<2x16x128xf32>
      %c0_65 = arith.constant 0 : index
      %c0_66 = arith.constant 0 : index
      %c0_67 = arith.constant 0 : index
      %132 = vector.load %arg15[%c0_65, %c0_66, %c0_67] : memref<2x16x128xf32, #tpu.memory_space<vmem>>, vector<2x16x128xf32>
      tpu.vector_store %arg15[%c0_65, %c0_66, %c0_67], %131 {strides = array<i32>} : memref<2x16x128xf32, #tpu.memory_space<vmem>>, vector<2x16x128xf32>,
    } else {
    }
    %c0 = arith.constant 0 : index
    %c0_1 = arith.constant 0 : index
    %c0_2 = arith.constant 0 : index
    %3 = vector.load %arg15[%c0, %c0_1, %c0_2] : memref<2x16x128xf32, #tpu.memory_space<vmem>>, vector<2x16x128xf32>
    %4 = vector.shape_cast %3 : vector<2x16x128xf32> to vector<32x128xf32>
    %c0_3 = arith.constant 0 : index
    %c0_4 = arith.constant 0 : index
    %c0_5 = arith.constant 0 : index
    %5 = vector.load %arg5[%c0_3, %c0_4, %c0_5] : memref<1x1x128xf32, #tpu.memory_space<vmem>>, vector<1x1x128xf32>
    %6 = vector.shape_cast %5 : vector<1x1x128xf32> to vector<1x128xf32>
    %c0_6 = arith.constant 0 : index
    %c0_7 = arith.constant 0 : index
    %c0_8 = arith.constant 0 : index
    %7 = vector.load %arg6[%c0_6, %c0_7, %c0_8] : memref<1x1x128xf32, #tpu.memory_space<vmem>>, vector<1x1x128xf32>
    %8 = vector.shape_cast %7 : vector<1x1x128xf32> to vector<1x128xf32>
    %cst = arith.constant dense<0.000000e+00> : vector<32xf32>
    %9 = vector.multi_reduction <add>, %4, %cst [1] : vector<32x128xf32> to vector<32xf32>
    %10 = vector.shape_cast %9 : vector<32xf32> to vector<32x1xf32>
    %cst_9 = arith.constant 3.200000e+01 : f32
    %11 = vector.broadcast %cst_9 : f32 to vector<32x1xf32>
    %12 = arith.divf %10, %11 : vector<32x1xf32>
    %13 = vector.broadcast %12 : vector<32x1xf32> to vector<32x128xf32>
    %14 = arith.subf %4, %13 : vector<32x128xf32>
    %15 = arith.mulf %14, %14 : vector<32x128xf32>
    %cst_10 = arith.constant dense<0.000000e+00> : vector<32xf32>
    %16 = vector.multi_reduction <add>, %15, %cst_10 [1] : vector<32x128xf32> to vector<32xf32>
    %17 = vector.shape_cast %16 : vector<32xf32> to vector<32x1xf32>
    %cst_11 = arith.constant 9.600000e+01 : f32
    %18 = vector.broadcast %cst_11 : f32 to vector<32x1xf32>
    %19 = arith.mulf %18, %12 : vector<32x1xf32>
    %20 = arith.mulf %19, %12 : vector<32x1xf32>
    %21 = arith.subf %17, %20 : vector<32x1xf32>
    %cst_12 = arith.constant 3.200000e+01 : f32
    %22 = vector.broadcast %cst_12 : f32 to vector<32x1xf32>
    %23 = arith.divf %21, %22 : vector<32x1xf32>
    %cst_13 = arith.constant 9.99999974E-6 : f32
    %24 = vector.broadcast %cst_13 : f32 to vector<32x1xf32>
    %25 = arith.addf %23, %24 : vector<32x1xf32>
    %26 = math.rsqrt %25 : vector<32x1xf32>
    %27 = vector.broadcast %26 : vector<32x1xf32> to vector<32x128xf32>
    %28 = arith.mulf %14, %27 : vector<32x128xf32>
    %29 = vector.broadcast %6 : vector<1x128xf32> to vector<32x128xf32>
    %30 = arith.mulf %28, %29 : vector<32x128xf32>
    %31 = vector.broadcast %8 : vector<1x128xf32> to vector<32x128xf32>
    %32 = arith.addf %30, %31 : vector<32x128xf32>
    %33 = arith.truncf %32 : vector<32x128xf32> to vector<32x128xbf16>
    %c0_14 = arith.constant 0 : index
    %c0_15 = arith.constant 0 : index
    %c0_16 = arith.constant 0 : index
    %34 = vector.load %arg7[%c0_14, %c0_15, %c0_16] : memref<1x128x256xbf16, #tpu.memory_space<vmem>>, vector<1x128x256xbf16>
    %35 = vector.shape_cast %34 : vector<1x128x256xbf16> to vector<128x256xbf16>
    %cst_17 = arith.constant dense<0.000000e+00> : vector<32x256xf32>
    %36 = tpu.matmul %33, %35, %cst_17 {dimension_numbers = #tpu.dot_dimension_numbers<[1], [0], [0], [1], [0, 0, 1, 1], [], []>} : vector<32x128xbf16>, vector<128x256xbf16>, vector<32x256xf32> -> vector<32x256xf32>
    %c0_18 = arith.constant 0 : index
    %c0_19 = arith.constant 0 : index
    %c0_20 = arith.constant 0 : index
    %37 = vector.load %arg8[%c0_18, %c0_19, %c0_20] : memref<1x1x256xf32, #tpu.memory_space<vmem>>, vector<1x1x256xf32>
    %38 = vector.shape_cast %37 : vector<1x1x256xf32> to vector<1x256xf32>
    %39 = vector.broadcast %38 : vector<1x256xf32> to vector<32x256xf32>
    %40 = arith.addf %36, %39 : vector<32x256xf32>
    %41 = vector.extract_strided_slice %40 {offsets = [0, 0], sizes = [32, 128], strides = [1, 1]} : vector<32x256xf32> to vector<32x128xf32>
    %cst_21 = arith.constant 5.000000e-01 : f32
    %42 = vector.broadcast %cst_21 : f32 to vector<32x128xf32>
    %43 = arith.mulf %42, %41 : vector<32x128xf32>
    %cst_22 = arith.constant 0.707106769 : f32
    %44 = vector.broadcast %cst_22 : f32 to vector<32x128xf32>
    %45 = arith.mulf %41, %44 : vector<32x128xf32>
    %46 = math.erf %45 : vector<32x128xf32>
    %cst_23 = arith.constant 1.000000e+00 : f32
    %47 = vector.broadcast %cst_23 : f32 to vector<32x128xf32>
    %48 = arith.addf %47, %46 : vector<32x128xf32>
    %49 = arith.mulf %43, %48 : vector<32x128xf32>
    %50 = arith.truncf %49 : vector<32x128xf32> to vector<32x128xbf16>
    %51 = vector.shape_cast %50 : vector<32x128xbf16> to vector<2x16x128xbf16>
    %52 = vector.extract_strided_slice %40 {offsets = [0, 128], sizes = [32, 128], strides = [1, 1]} : vector<32x256xf32> to vector<32x128xf32>
    %cst_24 = arith.constant 5.000000e-01 : f32
    %53 = vector.broadcast %cst_24 : f32 to vector<32x128xf32>
    %54 = arith.mulf %53, %52 : vector<32x128xf32>
    %cst_25 = arith.constant 0.707106769 : f32
    %55 = vector.broadcast %cst_25 : f32 to vector<32x128xf32>
    %56 = arith.mulf %52, %55 : vector<32x128xf32>
    %57 = math.erf %56 : vector<32x128xf32>
    %cst_26 = arith.constant 1.000000e+00 : f32
    %58 = vector.broadcast %cst_26 : f32 to vector<32x128xf32>
    %59 = arith.addf %58, %57 : vector<32x128xf32>
    %60 = arith.mulf %54, %59 : vector<32x128xf32>
    %c0_27 = arith.constant 0 : index
    %c0_28 = arith.constant 0 : index
    %c0_29 = arith.constant 0 : index
    %61 = vector.load %arg9[%c0_27, %c0_28, %c0_29] : memref<1x1x128xf32, #tpu.memory_space<vmem>>, vector<1x1x128xf32>
    %62 = vector.shape_cast %61 : vector<1x1x128xf32> to vector<1x128xf32>
    %c0_30 = arith.constant 0 : index
    %c0_31 = arith.constant 0 : index
    %c0_32 = arith.constant 0 : index
    %63 = vector.load %arg10[%c0_30, %c0_31, %c0_32] : memref<1x1x128xf32, #tpu.memory_space<vmem>>, vector<1x1x128xf32>
    %64 = vector.shape_cast %63 : vector<1x1x128xf32> to vector<1x128xf32>
    %cst_33 = arith.constant dense<0.000000e+00> : vector<32xf32>
    %65 = vector.multi_reduction <add>, %60, %cst_33 [1] : vector<32x128xf32> to vector<32xf32>
    %66 = vector.shape_cast %65 : vector<32xf32> to vector<32x1xf32>
    %cst_34 = arith.constant 6.400000e+01 : f32
    %67 = vector.broadcast %cst_34 : f32 to vector<32x1xf32>
    %68 = arith.divf %66, %67 : vector<32x1xf32>
    %69 = vector.broadcast %68 : vector<32x1xf32> to vector<32x128xf32>
    %70 = arith.subf %60, %69 : vector<32x128xf32>
    %71 = arith.mulf %70, %70 : vector<32x128xf32>
    %cst_35 = arith.constant dense<0.000000e+00> : vector<32xf32>
    %72 = vector.multi_reduction <add>, %71, %cst_35 [1] : vector<32x128xf32> to vector<32xf32>
    %73 = vector.shape_cast %72 : vector<32xf32> to vector<32x1xf32>
    %cst_36 = arith.constant 6.400000e+01 : f32
    %74 = vector.broadcast %cst_36 : f32 to vector<32x1xf32>
    %75 = arith.mulf %74, %68 : vector<32x1xf32>
    %76 = arith.mulf %75, %68 : vector<32x1xf32>
    %77 = arith.subf %73, %76 : vector<32x1xf32>
    %cst_37 = arith.constant 6.400000e+01 : f32
    %78 = vector.broadcast %cst_37 : f32 to vector<32x1xf32>
    %79 = arith.divf %77, %78 : vector<32x1xf32>
    %cst_38 = arith.constant 9.99999974E-6 : f32
    %80 = vector.broadcast %cst_38 : f32 to vector<32x1xf32>
    %81 = arith.addf %79, %80 : vector<32x1xf32>
    %82 = math.rsqrt %81 : vector<32x1xf32>
    %83 = vector.broadcast %82 : vector<32x1xf32> to vector<32x128xf32>
    %84 = arith.mulf %70, %83 : vector<32x128xf32>
    %85 = vector.broadcast %62 : vector<1x128xf32> to vector<32x128xf32>
    %86 = arith.mulf %84, %85 : vector<32x128xf32>
    %87 = vector.broadcast %64 : vector<1x128xf32> to vector<32x128xf32>
    %88 = arith.addf %86, %87 : vector<32x128xf32>
    %89 = vector.shape_cast %88 : vector<32x128xf32> to vector<2x16x128xf32>
    %90 = arith.truncf %89 : vector<2x16x128xf32> to vector<2x16x128xbf16>
    %c0_39 = arith.constant 0 : index
    %c0_40 = arith.constant 0 : index
    %c0_41 = arith.constant 0 : index
    %91 = vector.load %arg11[%c0_39, %c0_40, %c0_41] : memref<1x16x16xbf16, #tpu.memory_space<vmem>>, vector<1x16x16xbf16>
    %92 = vector.shape_cast %91 : vector<1x16x16xbf16> to vector<16x16xbf16>
    %c0_42 = arith.constant 0 : index
    %c0_43 = arith.constant 0 : index
    %c0_44 = arith.constant 0 : index
    %93 = vector.load %arg12[%c0_42, %c0_43, %c0_44] : memref<1x16x1xf32, #tpu.memory_space<vmem>>, vector<1x16x1xf32>
    %94 = vector.shape_cast %93 : vector<1x16x1xf32> to vector<16x1xf32>
    %95 = vector.extract_strided_slice %90 {offsets = [0, 0, 0], sizes = [1, 16, 128], strides = [1, 1, 1]} : vector<2x16x128xbf16> to vector<1x16x128xbf16>
    %96 = vector.shape_cast %95 : vector<1x16x128xbf16> to vector<16x128xbf16>
    %cst_45 = arith.constant dense<0.000000e+00> : vector<16x128xf32>
    %97 = tpu.matmul %92, %96, %cst_45 {dimension_numbers = #tpu.dot_dimension_numbers<[1], [0], [0], [1], [0, 0, 1, 1], [], []>} : vector<16x16xbf16>, vector<16x128xbf16>, vector<16x128xf32> -> vector<16x128xf32>
    %98 = vector.broadcast %94 : vector<16x1xf32> to vector<16x128xf32>
    %99 = arith.addf %97, %98 : vector<16x128xf32>
    %100 = arith.truncf %99 : vector<16x128xf32> to vector<16x128xbf16>
    %101 = vector.extract_strided_slice %51 {offsets = [0, 0, 0], sizes = [1, 16, 128], strides = [1, 1, 1]} : vector<2x16x128xbf16> to vector<1x16x128xbf16>
    %102 = vector.shape_cast %101 : vector<1x16x128xbf16> to vector<16x128xbf16>
    %103 = arith.mulf %100, %102 : vector<16x128xbf16>
    %104 = vector.extract_strided_slice %90 {offsets = [1, 0, 0], sizes = [1, 16, 128], strides = [1, 1, 1]} : vector<2x16x128xbf16> to vector<1x16x128xbf16>
    %105 = vector.shape_cast %104 : vector<1x16x128xbf16> to vector<16x128xbf16>
    %cst_46 = arith.constant dense<0.000000e+00> : vector<16x128xf32>
    %106 = tpu.matmul %92, %105, %cst_46 {dimension_numbers = #tpu.dot_dimension_numbers<[1], [0], [0], [1], [0, 0, 1, 1], [], []>} : vector<16x16xbf16>, vector<16x128xbf16>, vector<16x128xf32> -> vector<16x128xf32>
    %107 = vector.broadcast %94 : vector<16x1xf32> to vector<16x128xf32>
    %108 = arith.addf %106, %107 : vector<16x128xf32>
    %109 = arith.truncf %108 : vector<16x128xf32> to vector<16x128xbf16>
    %110 = vector.extract_strided_slice %51 {offsets = [1, 0, 0], sizes = [1, 16, 128], strides = [1, 1, 1]} : vector<2x16x128xbf16> to vector<1x16x128xbf16>
    %111 = vector.shape_cast %110 : vector<1x16x128xbf16> to vector<16x128xbf16>
    %112 = arith.mulf %109, %111 : vector<16x128xbf16>
    %113 = tpu.concatenate %103, %112 in 0 : vector<16x128xbf16>, vector<16x128xbf16> -> vector<32x128xbf16>
    %c0_47 = arith.constant 0 : index
    %c0_48 = arith.constant 0 : index
    %c0_49 = arith.constant 0 : index
    %114 = vector.load %arg13[%c0_47, %c0_48, %c0_49] : memref<1x128x128xbf16, #tpu.memory_space<vmem>>, vector<1x128x128xbf16>
    %115 = vector.shape_cast %114 : vector<1x128x128xbf16> to vector<128x128xbf16>
    %cst_50 = arith.constant dense<0.000000e+00> : vector<32x128xf32>
    %116 = tpu.matmul %113, %115, %cst_50 {dimension_numbers = #tpu.dot_dimension_numbers<[1], [0], [0], [1], [0, 0, 1, 1], [], []>} : vector<32x128xbf16>, vector<128x128xbf16>, vector<32x128xf32> -> vector<32x128xf32>
    %c0_51 = arith.constant 0 : index
    %c0_52 = arith.constant 0 : index
    %c0_53 = arith.constant 0 : index
    %117 = vector.load %arg14[%c0_51, %c0_52, %c0_53] : memref<1x1x128xf32, #tpu.memory_space<vmem>>, vector<1x1x128xf32>
    %118 = vector.shape_cast %117 : vector<1x1x128xf32> to vector<1x128xf32>
    %119 = vector.broadcast %118 : vector<1x128xf32> to vector<32x128xf32>
    %120 = arith.addf %116, %119 : vector<32x128xf32>
    %121 = arith.addf %4, %120 : vector<32x128xf32>
    %122 = vector.shape_cast %121 : vector<32x128xf32> to vector<2x16x128xf32>
    %c0_54 = arith.constant 0 : index
    %c0_55 = arith.constant 0 : index
    %c0_56 = arith.constant 0 : index
    %123 = vector.load %arg15[%c0_54, %c0_55, %c0_56] : memref<2x16x128xf32, #tpu.memory_space<vmem>>, vector<2x16x128xf32>
    tpu.vector_store %arg15[%c0_54, %c0_55, %c0_56], %122 {strides = array<i32>} : memref<2x16x128xf32, #tpu.memory_space<vmem>>, vector<2x16x128xf32>,
    return
  }
  func.func @transform_0(%arg0: i32, %arg1: i32) -> (i32, i32, i32) {
    %c0_i32 = arith.constant 0 : i32
    %c0_i32_0 = arith.constant 0 : i32
    %c0_i32_1 = arith.constant 0 : i32
    return %arg0, %c0_i32, %c0_i32_0 : i32, i32, i32
  }
  func.func @transform_1(%arg0: i32, %arg1: i32) -> (i32, i32) {
    %c0_i32 = arith.constant 0 : i32
    %c0_i32_0 = arith.constant 0 : i32
    %c0_i32_1 = arith.constant 0 : i32
    return %c0_i32, %c0_i32_0 : i32, i32
  }
  func.func @transform_2(%arg0: i32, %arg1: i32) -> (i32, i32) {
    %c0_i32 = arith.constant 0 : i32
    %c0_i32_0 = arith.constant 0 : i32
    %c0_i32_1 = arith.constant 0 : i32
    return %c0_i32, %c0_i32_0 : i32, i32
  }
  func.func @transform_3(%arg0: i32, %arg1: i32) -> (i32, i32, i32) {
    %c0_i32 = arith.constant 0 : i32
    %c0_i32_0 = arith.constant 0 : i32
    %c0_i32_1 = arith.constant 0 : i32
    return %arg1, %c0_i32, %c0_i32_0 : i32, i32, i32
  }
  func.func @transform_4(%arg0: i32, %arg1: i32) -> (i32, i32, i32) {
    %c0_i32 = arith.constant 0 : i32
    %c0_i32_0 = arith.constant 0 : i32
    %c0_i32_1 = arith.constant 0 : i32
    return %arg1, %c0_i32, %c0_i32_0 : i32, i32, i32
  }
  func.func @transform_5(%arg0: i32, %arg1: i32) -> (i32, i32, i32) {
    %c0_i32 = arith.constant 0 : i32
    %c0_i32_0 = arith.constant 0 : i32
    %c0_i32_1 = arith.constant 0 : i32
    return %arg1, %c0_i32, %c0_i32_0 : i32, i32, i32
  }
  func.func @transform_6(%arg0: i32, %arg1: i32) -> (i32, i32, i32) {
    %c0_i32 = arith.constant 0 : i32
    %c0_i32_0 = arith.constant 0 : i32
    %c0_i32_1 = arith.constant 0 : i32
    return %arg1, %c0_i32, %c0_i32_0 : i32, i32, i32
  }
  func.func @transform_7(%arg0: i32, %arg1: i32) -> (i32, i32, i32) {
    %c0_i32 = arith.constant 0 : i32
    %c0_i32_0 = arith.constant 0 : i32
    %c0_i32_1 = arith.constant 0 : i32
    return %arg1, %c0_i32, %c0_i32_0 : i32, i32, i32
  }
  func.func @transform_8(%arg0: i32, %arg1: i32) -> (i32, i32, i32) {
    %c0_i32 = arith.constant 0 : i32
    %c0_i32_0 = arith.constant 0 : i32
    %c0_i32_1 = arith.constant 0 : i32
    return %arg1, %c0_i32, %c0_i32_0 : i32, i32, i32
  }
  func.func @transform_9(%arg0: i32, %arg1: i32) -> (i32, i32, i32) {
    %c0_i32 = arith.constant 0 : i32
    %c0_i32_0 = arith.constant 0 : i32
    %c0_i32_1 = arith.constant 0 : i32
    return %arg1, %c0_i32, %c0_i32_0 : i32, i32, i32
  }
  func.func @transform_10(%arg0: i32, %arg1: i32) -> (i32, i32, i32) {
    %c0_i32 = arith.constant 0 : i32
    %c0_i32_0 = arith.constant 0 : i32
    %c0_i32_1 = arith.constant 0 : i32
    return %arg1, %c0_i32, %c0_i32_0 : i32, i32, i32
  }
  func.func @transform_11(%arg0: i32, %arg1: i32) -> (i32, i32, i32) {
    %c0_i32 = arith.constant 0 : i32
    %c0_i32_0 = arith.constant 0 : i32
    %c0_i32_1 = arith.constant 0 : i32
    return %arg1, %c0_i32, %c0_i32_0 : i32, i32, i32
  }
  func.func @transform_12(%arg0: i32, %arg1: i32) -> (i32, i32, i32) {
    %c0_i32 = arith.constant 0 : i32
    %c0_i32_0 = arith.constant 0 : i32
    %c0_i32_1 = arith.constant 0 : i32
    return %arg1, %c0_i32, %c0_i32_0 : i32, i32, i32
  }
  func.func @transform_13(%arg0: i32, %arg1: i32) -> (i32, i32, i32) {
    %c0_i32 = arith.constant 0 : i32
    %c0_i32_0 = arith.constant 0 : i32
    %c0_i32_1 = arith.constant 0 : i32
    return %arg0, %c0_i32, %c0_i32_0 : i32, i32, i32
  }
}

</mosaic_0001>

<bundles_post_ra>
// kernel: tpu_custom_call.1
= control target key start
LH: loop header
LB: loop body
LE: loop exit
PB: predicated region body
PF: predicated region fallthrough
CT: control target
= control target key end

     0   :  { %s3377_s0 = inlined_call_operand.vmem [shape: bf16[2,16,128], index: 0, kind: input, shape index: {}]   ;;  %s3378_s1 = inlined_call_operand.hbm [shape: bf16[128,128], index: 1, kind: input, shape index: {}]   ;;  %s3379_s2 = inlined_call_operand.hbm [shape: f32[1,128], index: 2, kind: input, shape index: {}]   ;;  %s3380_s3 = inlined_call_operand.hbm [shape: f32[2,1,128], index: 3, kind: input, shape index: {}]   ;;  %s3381_s4 = inlined_call_operand.hbm [shape: f32[2,1,128], index: 4, kind: input, shape index: {}]   ;;  %s3382_s5 = inlined_call_operand.hbm [shape: bf16[2,128,256], index: 5, kind: input, shape index: {}]   ;;  %s3383_s6 = inlined_call_operand.vmem [shape: f32[2,1,256], index: 6, kind: input, shape index: {}]   ;;  %s3384_s7 = inlined_call_operand.vmem [shape: f32[2,1,128], index: 7, kind: input, shape index: {}]   ;;  %s3385_s8 = inlined_call_operand.hbm [shape: f32[2,1,128], index: 8, kind: input, shape index: {}]   ;;  %s3386_s9 = inlined_call_operand.vmem [shape: bf16[2,16,16], index: 9, kind: input, shape index: {}]   ;;  %s3387_s10 = inlined_call_operand.vmem [shape: f32[2,16,1], index: 10, kind: input, shape index: {}]   ;;  %s3388_s11 = inlined_call_operand.hbm [shape: bf16[2,128,128], index: 11, kind: input, shape index: {}]   ;;  %s3389_s12 = inlined_call_operand.vmem [shape: f32[2,1,128], index: 12, kind: input, shape index: {}]   ;;  %s3390_s13 = inlined_call_operand.hbm [shape: f32[2,16,128], index: 13, kind: output, shape index: {}]  }
   0x1   :  { %3396 = sst [smem:[#allocation20_spill]] %s3377_s0 }
   0x2   :  { %3397 = sst [smem:[#allocation21_spill]] %s3378_s1 }
   0x3   :  { %3398 = sst [smem:[#allocation22_spill]] %s3379_s2 }
   0x4   :  { %3399 = sst [smem:[#allocation23_spill]] %s3380_s3 }
   0x5   :  { %3400 = sst [smem:[#allocation24_spill]] %s3381_s4 }
   0x6   :  { %3401 = sst [smem:[#allocation25_spill]] %s3382_s5 }
   0x7   :  { %3402 = sst [smem:[#allocation26_spill]] %s3385_s8 }
   0x8   :  { %3403 = sst [smem:[#allocation27_spill]] %s3387_s10 }
   0x9   :  { %3404 = sst [smem:[#allocation28_spill]] %s3389_s12 }
   0xa   :  { %3405 = sst [smem:[#allocation29_spill]] %s3390_s13 }
   0xb   :  { %18 = vsyncpa [#allocation3], 0 }
   0xc   :  { %19 = vsyncpa [#allocation6], 0 }
   0xd   :  { %20 = vsyncpa [#allocation4], 0  ;;  %s2788_s25 = smov 0   ;;  %s2790_s26 = smov 0  }
   0xe   :  { %s2792_s27 = smov 0   ;;  %s2794_s28 = smov 0  }
   0xf   :  { %s2796_s29 = smov 0   ;;  %s2798_s30 = smov 0  }
  0x10 LB: > { %3406 = sst [smem:[#allocation17_spill]] %s2704_s30  ;;  %s2817_s14 = sadd.s32 4294967295, %s2704_s30   ;;  %s2704_s30 = sphi %s2798_s30, %s26_s30   ;;  %s2700_s29 = sphi %s2796_s29, %s3438_s29   ;;  %s2696_s28 = sphi %s2794_s28, %s3437_s28   ;;  %s2692_s27 = sphi %s2792_s27, %s3436_s27   ;;  %s2688_s26 = sphi %s2790_s26, %s3435_s26   ;;  %s2684_s25 = sphi %s2788_s25, %s3434_s25  }
  0x11   : > { %p126_p0 = scmp.ne.s32.totalorder %s2688_s26, %s2684_s25  ;;  %p127_p1 = scmp.eq.s32.totalorder %s2817_s14, 0 }
  0x12   : > { %p2012_p2 = scmp.ge.s32.totalorder %s2704_s30, 1  ;;  %p397_p3 = scmp.lt.s32.totalorder %s2704_s30, 3 }
  0x13   : > { %p2825_p4 = por %p127_p1, %p126_p0  ;;  %s3408_s1 = sld [smem:[#allocation21_spill]] }
  0x14   : > { %p2832_p5 = pnand %p2012_p2, %p397_p3  ;;  %s2706_s20 = smov [#allocation2]  }
  0x15   : > { %s420_s21 = sshll.u32 %s2706_s20, 4  ;;  %s3391_s23 = smov 64   ;;  %s421_s21 = int_to_ptr.vmem [resolvable:$true] %s420_s21 }
  0x16   : > { %p2265_p6 = pneg %p2832_p5  ;;  %s3392_s24 = smov 4  }
  0x17   : > { %s35_s25 = sadd.s32 1, %s2700_s29  ;;  %s113_s16 = sadd.s32 1, %s2692_s27 }
  0x18   : > { %p2840_p7 = pnand %p2265_p6, %p127_p1  ;;  %p36_p8 = scmp.ge.s32.totalorder %s35_s25, 2 }
  0x19   : > { %s418_s18 = sshll.u32 %s3408_s1, 4  ;;  %p120_p9 = scmp.ne.s32.totalorder %s2692_s27, %s2688_s26  ;;  %s419_s18 = int_to_ptr.hbm [resolvable:$true] %s418_s18 }
  0x1a   : > { %2268 = dma.hbm_to_vmem [thread:$0]  (!%p2840_p7), %s419_s18, 1024, %s421_s21, [#allocation3], %s3391_s23, %s3391_s23, %s3392_s24  }
  0x1b   : > { %p121_p10 = scmp.eq.s32.totalorder %s2704_s30, 0  ;;  %s3440_s25 = smov (%p36_p8, %s35_s25), 0 }
  0x1c   : > { %3411 = sst [smem:[#allocation18_spill]] %s3440_s25  ;;  %p2290_p12 = scmp.lt.s32.totalorder %s2704_s30, 2 }
  0x1d   : > { %p2856_p11 = por %p121_p10, %p120_p9  ;;  %s110_s20 = ssub.s32 %s2700_s29, %s3440_s25 }
  0x1e   : > { %s446_s1 = sand.u32 1, %s2704_s30   ;;  %p111_p13 = scmp.eq.s32.totalorder %s110_s20, 0 }
  0x1f   : > { %s2865_s13 = sand.u32 1, %s2692_s27   ;;  %s3413_s3 = sld [smem:[#allocation23_spill]] }
  0x20   : > { %s2872_s24 = scalar_select %p111_p13, %s2692_s27, %s113_s16  }
  0x21   : > { %s449_s12 = scalar_lea.vmem [#allocation7], %s2865_s13  ;;  %p2877_p0 = pnand %p2290_p12, %p2856_p11 }
  0x22   : > { %3414 = sst [smem:[#allocation19_spill]] %s2872_s24  ;;  %s456_s10 = sshll.u32 %s449_s12, 4  ;;  %s457_s10 = int_to_ptr.vmem [resolvable:$true] %s456_s10 }
  0x23   : > { %s3416_s4 = sld [smem:[#allocation24_spill]]  ;;  %s2885_s16 = scalar_lea.sflag [#allocation3], %s446_s1 }
  0x24   : > { %s466_s12 = scalar_lea.vmem [#allocation8], %s2865_s13  ;;  %s2017_s17 = sshll.u32 %s2865_s13, 7 }
  0x25   : > { %s452_s23 = scalar_lea.hbm %s3413_s3, %s2700_s29  ;;  %s2188_s30 = sshll.u32 %s2700_s29, 7 }
  0x26   : > { %s454_s0 = sshll.u32 %s452_s23, 4  ;;  %s473_s23 = sshll.u32 %s466_s12, 4  ;;  %s455_s0 = int_to_ptr.hbm [resolvable:$true] %s454_s0  ;;  %s474_s23 = int_to_ptr.vmem [resolvable:$true] %s473_s23 }
  0x27   : > { %2275 = dma.hbm_to_vmem [thread:$0]  (!%p2877_p0), %s455_s0, 16, %s457_s10, %s2885_s16  }
  0x28   : > { %s3417_s5 = sld [smem:[#allocation25_spill]]  ;;  %s484_s3 = scalar_lea.vmem [#allocation9], %s2017_s17 }
  0x29   : > { %s469_s18 = scalar_lea.hbm %s3416_s4, %s2700_s29  ;;  %s492_s0 = sshll.u32 %s484_s3, 4  ;;  %s493_s0 = int_to_ptr.vmem [resolvable:$true] %s492_s0 }
  0x2a   : > { %s471_s21 = sshll.u32 %s469_s18, 4  ;;  %s2709_s4 = smov 128   ;;  %s472_s21 = int_to_ptr.hbm [resolvable:$true] %s471_s21 }
  0x2b   : > { %2278 = dma.hbm_to_vmem [thread:$0]  (!%p2877_p0), %s472_s21, 16, %s474_s23, %s2885_s16  }
  0x2c   : > { %s2710_s12 = smov 8   ;;  %s3418_s8 = sld [smem:[#allocation26_spill]] }
  0x2d   : > { %s518_s25 = scalar_lea.vmem [#allocation10], %s2865_s13  ;;  %s3419_s2 = sld [smem:[#allocation22_spill]] }
  0x2e   : > { %s489_s1 = scalar_lea.hbm %s3417_s5, %s2188_s30  ;;  %s525_s30 = sshll.u32 %s518_s25, 4  ;;  %s526_s30 = int_to_ptr.vmem [resolvable:$true] %s525_s30 }
  0x2f   : > { %s490_s10 = sshll.u32 %s489_s1, 4  ;;  %s2711_s5 = smov [#allocation5]   ;;  %s491_s10 = int_to_ptr.hbm [resolvable:$true] %s490_s10 }
  0x30   : > { %2281 = dma.hbm_to_vmem [thread:$0]  (!%p2877_p0), %s491_s10, 2048, %s493_s0, %s2885_s16, %s2709_s4, %s2709_s4, %s2710_s12  }
  0x31   : > { %s435_s4 = sshll.u32 %s2711_s5, 4  ;;  %s2020_s0 = sshll.u32 %s2865_s13, 6  ;;  %s436_s4 = int_to_ptr.vmem [resolvable:$true] %s435_s4 }
  0x32   : > { %s521_s24 = scalar_lea.hbm %s3418_s8, %s2700_s29  ;;  %s2189_s10 = sshll.u32 %s2700_s29, 6 }
  0x33   : > { %s523_s18 = sshll.u32 %s521_s24, 4  ;;  %s433_s1 = sshll.u32 %s3419_s2, 4  ;;  %s524_s18 = int_to_ptr.hbm [resolvable:$true] %s523_s18  ;;  %s434_s1 = int_to_ptr.hbm [resolvable:$true] %s433_s1 }
  0x34   : > { %2284 = dma.hbm_to_vmem [thread:$0]  (!%p2877_p0), %s524_s18, 16, %s526_s30, %s2885_s16  }
  0x35   : > { %2271 = dma.hbm_to_vmem [thread:$0]  (!%p2840_p7), %s434_s1, 16, %s436_s4, [#allocation6]  }
  0x36   : > { %s552_s12 = scalar_lea.vmem [#allocation11], %s2020_s0  ;;  %s557_s25 = scalar_lea.hbm %s3388_s11, %s2189_s10 }
  0x37   : > { %s560_s24 = sshll.u32 %s552_s12, 4  ;;  %s558_s3 = sshll.u32 %s557_s25, 4  ;;  %s561_s24 = int_to_ptr.vmem [resolvable:$true] %s560_s24  ;;  %s559_s3 = int_to_ptr.hbm [resolvable:$true] %s558_s3 }
  0x38   : > { %s3420_s17 = smov 4   ;;  %s3421_s30 = smov 64  }
  0x39   : > { %2287 = dma.hbm_to_vmem [thread:$0]  (!%p2877_p0), %s559_s3, 1024, %s561_s24, %s2885_s16, %s3421_s30, %s3421_s30, %s3420_s17  }
  0x3a   : > { %578 = sbr.rel (%p2832_p5) target bundleno = 1317 (0x525), region = 72 }
  0x3f   : > { %2667 = dma.done.wait (%p127_p1), [#allocation3], 1024  }
  0x40   : > { %2669 = vsyncadd (%p127_p1), [#allocation3], 4294966272 }
  0x41   : > { %2671 = dma.done.wait (%p127_p1), [#allocation6], 16  }
  0x42   : > { %2673 = vsyncadd (%p127_p1), [#allocation6], 4294967280  ;;  %s590_s5 = sand.u32 1, %s2817_s14   ;;  %s2938_s13 = sand.u32 1, %s2688_s26  }
  0x43   : > { %s591_s19 = scalar_lea.sflag [#allocation3], %s590_s5 }
  0x44   : > { %2675 = dma.done.wait (%p2825_p4), %s591_s19, 3120  }
  0x45   : > { %2677 = vsyncadd (%p2825_p4), %s591_s19, 4294964176  ;;  %s2026_s20 = sshll.u32 %s2938_s13, 7  ;;  %s2027_s16 = sshll.u32 %s2938_s13, 6 }
  0x46   : > { %p720_p1 = scmp.lt.s32.totalorder %s2696_s28, 1  ;;  %s3422_s19 = sld [smem:[#allocation27_spill]] }
  0x47   : > { %s3423_s15 = sld [smem:[#allocation28_spill]]  ;;  %s602_s8 = scalar_lea.vmem [#allocation8], %s2938_s13 }
  0x48   : > { %s2949_s18 = scalar_select %p720_p1, %s2696_s28, 1 }
  0x49   : > { %s2978_s10 = scalar_lea.vmem [#allocation9], %s2026_s20  ;;  %s2981_s12 = scalar_lea.vmem [#allocation11], %s2027_s16 }
  0x4a   : > { %s2028_s1 = sshll.u32 %s2949_s18, 1  ;;  %s2190_s21 = sshll.u32 %s2949_s18, 3 }
  0x4b   : > { %s2959_s24 = scalar_lea.vmem %s3383_s6, %s2028_s1  ;;  %s2965_s3 = scalar_lea.vmem %s3386_s9, %s2190_s21 }
  0x4c   : > { %s2191_s17 = sshll.u32 %s2949_s18, 4  ;;  %s621_s1 = scalar_lea.vmem [#allocation10], %s2938_s13 }
  0x4d   : > { %s2971_s22 = scalar_lea.vmem %s3422_s19, %s2191_s17  ;;  %s739_s0 = scalar_lea.vmem %s3423_s15, %s2949_s18 }
  0x4e   : > { %p2033_p2 = scmp.ne.s32.totalorder %s2696_s28, 0 }
  0x4f   : > { %s3424_s20 = sld [smem:[#allocation20_spill]] (!%p2033_p2) }
  0x50   : > { %745 = sbr.rel (%p2033_p2) target bundleno = 255 (0xff), region = 104 }
  0x55   : > { %v2201_v0 = vld [vmem:[#allocation2 + $0x38] sm:$0xff]  ;;  %v2200_v1 = vld [vmem:[#allocation2 + $0x30] sm:$0xff]  ;;  %v2199_v2 = vld [vmem:[#allocation2 + $0x28] sm:$0xff] }
  0x56   : > { %830 = vmatpush.bf16.msra.mxu0 %v2201_v0  ;;  %2227 = vmatpush.bf16.msra.mxu1 %v2201_v0  ;;  %v2198_v3 = vld [vmem:[#allocation2 + $0x20] sm:$0xff]  ;;  %v2197_v4 = vld [vmem:[#allocation2 + $0x18] sm:$0xff]  ;;  %v2196_v5 = vld [vmem:[#allocation2 + $0x10] sm:$0xff] }
  0x57   : > { %v2195_v6 = vld [vmem:[#allocation2 + $0x8] sm:$0xff]  ;;  %v2194_v7 = vld [vmem:[#allocation2] sm:$0xff] }
  0x58   : > { %v2192_v8 = vld [vmem:[%s3424_s20] sm:$0xff]  ;;  %v2193_v9 = vld [vmem:[%s3424_s20 + $0x8] sm:$0xff] }
  0x59   : > { %v2355_v10 = vld [vmem:[#allocation5] ss:$0 sm:$0xff] }
  0x5a   : > { %831 = vmatpush.bf16.msra.mxu0 %v2200_v1  ;;  %2228 = vmatpush.bf16.msra.mxu1 %v2200_v1 }
  0x5e   : > { %832 = vmatpush.bf16.msra.mxu0 %v2199_v2  ;;  %2229 = vmatpush.bf16.msra.mxu1 %v2199_v2 }
  0x62   : > { %833 = vmatpush.bf16.msra.mxu0 %v2198_v3  ;;  %2230 = vmatpush.bf16.msra.mxu1 %v2198_v3 }
  0x66   : > { %834 = vmatpush.bf16.msra.mxu0 %v2197_v4  ;;  %2231 = vmatpush.bf16.msra.mxu1 %v2197_v4 }
  0x6a   : > { %835 = vmatpush.bf16.msra.mxu0 %v2196_v5  ;;  %2232 = vmatpush.bf16.msra.mxu1 %v2196_v5 }
  0x6e   : > { %836 = vmatpush.bf16.msra.mxu0 %v2195_v6  ;;  %2233 = vmatpush.bf16.msra.mxu1 %v2195_v6 }
  0x72   : > { %837 = vmatpush.bf16.msra.mxu0 %v2194_v7  ;;  %2234 = vmatpush.bf16.msra.mxu1 %v2194_v7 }
  0x75   : > { %838 = vmatmul.bf16.vlgmr.msra.gmra.mxu0 %v2192_v8  ;;  %843 = vmatmul.bf16.vlgmr.msra.gmra.mxu1 %v2193_v9 }
  0xf2   : > { %v839_v11 = vpop.f32.mrf.mxu0  ;;  %v844_v12 = vpop.f32.mrf.mxu1 }
  0xf3   : > { %v840_v13 = vadd.f32 %v2355_v10, %v839_v11  ;;  %v845_v14 = vadd.f32 %v2355_v10, %v844_v12 }
  0xf5   : > { %849 = vst [vmem:[#allocation12] sm:$0xff] %v840_v13 }
  0xf6   : > { %851 = vst [vmem:[#allocation12 + $0x10] sm:$0xff] %v845_v14 }
  0xfa   : > { %v841_v15 = vpop.f32.mrf.mxu0  ;;  %v846_v16 = vpop.f32.mrf.mxu1 }
  0xfb   : > { %v842_v17 = vadd.f32 %v2355_v10, %v841_v15  ;;  %v847_v18 = vadd.f32 %v2355_v10, %v846_v16 }
  0xfd   : > { %850 = vst [vmem:[#allocation12 + $0x8] sm:$0xff] %v842_v17 }
  0xfe   : > { %852 = vst [vmem:[#allocation12 + $0x18] sm:$0xff] %v847_v18 }
  0xff PF: > { %v855_v19 = vld [vmem:[#allocation12 + $0x10] sm:$0xff]  ;;  %v853_v20 = vld [vmem:[#allocation12] sm:$0xff]  ;;  %v2712_v23 = vmov 32.0   ;;  %v2134_v50 = vld [vmem:[%s2978_s10 + $0x78] sm:$0xf0]  ;;  %s3425_s23 = scalar_lea.vmem [#allocation7], %s2938_s13  ;;  %s3426_s25 = scalar_lea.vmem %s3384_s7, %s2949_s18 }
 0x100   : > { %863 = vadd.xlane.f32.xlu1 %v855_v19  ;;  %859 = vadd.xlane.f32.xlu0 %v853_v20  ;;  %2364 = vrcp.f32 %v2712_v23  ;;  %v2132_v46 = vld [vmem:[%s2978_s10 + $0x70] sm:$0xf]  ;;  %v2217_v47 = vld [vmem:[%s2978_s10 + $0x74] sm:$0xf0]  ;;  %v2216_v48 = vld [vmem:[%s2978_s10 + $0x74] sm:$0xf] }
 0x101   : > { %v2133_v49 = vor.u32 %v2217_v47, %v2132_v46  ;;  %v2137_v51 = vor.u32 %v2216_v48, %v2134_v50  ;;  %v2124_v52 = vld [vmem:[%s2978_s10 + $0x60] sm:$0xf]  ;;  %v2215_v53 = vld [vmem:[%s2978_s10 + $0x64] sm:$0xf0]  ;;  %v2214_v54 = vld [vmem:[%s2978_s10 + $0x64] sm:$0xf] }
 0x102   : > { %v2125_v55 = vor.u32 %v2215_v53, %v2124_v52  ;;  %v2126_v56 = vld [vmem:[%s2978_s10 + $0x68] sm:$0xf0]  ;;  %v2116_v58 = vld [vmem:[%s2978_s10 + $0x50] sm:$0xf]  ;;  %v2213_v59 = vld [vmem:[%s2978_s10 + $0x54] sm:$0xf0] }
 0x103   : > { %1076 = vmatpush.bf16.msra.mxu0 %v2133_v49  ;;  %1095 = vmatpush.bf16.msra.mxu1 %v2137_v51  ;;  %v2129_v57 = vor.u32 %v2214_v54, %v2126_v56  ;;  %v2212_v60 = vld [vmem:[%s2978_s10 + $0x54] sm:$0xf]  ;;  %v2117_v61 = vor.u32 %v2213_v59, %v2116_v58  ;;  %v2118_v62 = vld [vmem:[%s2978_s10 + $0x58] sm:$0xf0]  ;;  %v2108_v0 = vld [vmem:[%s2978_s10 + $0x40] sm:$0xf] }
 0x104   : > { %v854_v22 = vld [vmem:[#allocation12 + $0x8] sm:$0xff]  ;;  %v2121_v63 = vor.u32 %v2212_v60, %v2118_v62  ;;  %v2210_v2 = vld [vmem:[%s2978_s10 + $0x44] sm:$0xf]  ;;  %v2209_v7 = vld [vmem:[%s2978_s10 + $0x34] sm:$0xf0]  ;;  %s2715_s17 = smov [#allocation12]  }
 0x105   : > { %v856_v21 = vld [vmem:[#allocation12 + $0x18] sm:$0xff]  ;;  %v2211_v1 = vld [vmem:[%s2978_s10 + $0x44] sm:$0xf0]  ;;  %v2110_v4 = vld [vmem:[%s2978_s10 + $0x48] sm:$0xf0]  ;;  %s1788_s30 = sshll.u32 %s2715_s17, 4  ;;  %s1789_s30 = int_to_ptr.vmem [resolvable:$true] %s1788_s30 }
 0x106   : > { %v2365_v24 = vpop.eup %2364  ;;  %v2109_v3 = vor.u32 %v2211_v1, %v2108_v0  ;;  %v2113_v5 = vor.u32 %v2210_v2, %v2110_v4  ;;  %v2100_v6 = vld [vmem:[%s2978_s10 + $0x30] sm:$0xf]  ;;  %v2208_v8 = vld [vmem:[%s2978_s10 + $0x34] sm:$0xf]  ;;  %v2102_v10 = vld [vmem:[%s2978_s10 + $0x38] sm:$0xf0] }
 0x107   : > { %v868_v25 = vmul.f32 32.0, %v2365_v24  ;;  %vm872_vm0 = vweird.f32 %v2365_v24  ;;  %1077 = vmatpush.bf16.msra.mxu0 %v2125_v55  ;;  %1096 = vmatpush.bf16.msra.mxu1 %v2129_v57  ;;  %v2101_v9 = vor.u32 %v2209_v7, %v2100_v6  ;;  %v2105_v11 = vor.u32 %v2208_v8, %v2102_v10  ;;  %v2092_v14 = vld [vmem:[%s2978_s10 + $0x20] sm:$0xf]  ;;  %v2207_v15 = vld [vmem:[%s2978_s10 + $0x24] sm:$0xf0]  ;;  %s3430_s5 = sld [smem:[#allocation29_spill]] }
 0x108   : > { %865 = vadd.xlane.f32.xlu1 %v856_v21  ;;  %861 = vadd.xlane.f32.xlu0 %v854_v22  ;;  %v2206_v16 = vld [vmem:[%s2978_s10 + $0x24] sm:$0xf]  ;;  %v2093_v17 = vor.u32 %v2207_v15, %v2092_v14  ;;  %v2094_v18 = vld [vmem:[%s2978_s10 + $0x28] sm:$0xf0]  ;;  %v2205_v23 = vld [vmem:[%s2978_s10 + $0x14] sm:$0xf0] }
 0x109   : > { %v869_v26 = vsub.f32 1.0, %v868_v25  ;;  %p2293_p3 = scmp.eq.s32.totalorder %s2817_s14, 1  ;;  %s2716_s4 = smov 128  }
 0x10a   : > { %s2717_s15 = smov 8  }
 0x10b   : > { %v870_v27 = vmul.f32 %v2365_v24, %v869_v26  ;;  %1078 = vmatpush.bf16.msra.mxu0 %v2117_v61  ;;  %1097 = vmatpush.bf16.msra.mxu1 %v2121_v63 }
 0x10d   : > { %v871_v28 = vadd.f32 %v2365_v24, %v870_v27  ;;  %s1790_s19 = sshll.u32 %s3430_s5, 4  ;;  %s1791_s19 = int_to_ptr.hbm [resolvable:$true] %s1790_s19 }
 0x10f   : > { %v2990_v29 = vsel %vm872_vm0, %v2365_v24, %v871_v28  ;;  %1079 = vmatpush.bf16.msra.mxu0 %v2109_v3  ;;  %1098 = vmatpush.bf16.msra.mxu1 %v2113_v5  ;;  %v2204_v24 = vld [vmem:[%s2978_s10 + $0x14] sm:$0xf]  ;;  %v2086_v28 = vld [vmem:[%s2978_s10 + $0x18] sm:$0xf0] }
 0x113   : > { %1080 = vmatpush.bf16.msra.mxu0 %v2101_v9  ;;  %1099 = vmatpush.bf16.msra.mxu1 %v2105_v11 }
 0x117   : > { %1081 = vmatpush.bf16.msra.mxu0 %v2093_v17 }
 0x173   : > { %v864_v30 = vpop.xlane.xlu1 %863  ;;  %v860_v31 = vpop.xlane.xlu0 %859 }
 0x174   : > { %v2993_v32 = vmul.f32 %v2990_v29, %v864_v30  ;;  %v2996_v33 = vmul.f32 %v2990_v29, %v860_v31  ;;  %v2076_v30 = vld [vmem:[%s2978_s10] sm:$0xf]  ;;  %v2203_v31 = vld [vmem:[%s2978_s10 + $0x4] sm:$0xf0] }
 0x175   : > { %v2077_v47 = vor.u32 %v2203_v31, %v2076_v30 }
 0x176   : > { %v2999_v34 = vsub.f32 %v855_v19, %v2993_v32  ;;  %v3002_v35 = vsub.f32 %v853_v20, %v2996_v33  ;;  %v894_v12 = vmul.f32 96.0, %v2996_v33  ;;  %v896_v13 = vmul.f32 96.0, %v2993_v32 }
 0x177   : > { %v2097_v19 = vor.u32 %v2206_v16, %v2094_v18  ;;  %v2359_v18 = vld [vmem:[%s3425_s23] ss:$0 sm:$0xff] }
 0x178   : > { %v884_v36 = vmul.f32 %v2999_v34, %v2999_v34  ;;  %v882_v37 = vmul.f32 %v3002_v35, %v3002_v35  ;;  %v898_v20 = vmul.f32 %v894_v12, %v2996_v33  ;;  %v2078_v33 = vld [vmem:[%s2978_s10 + $0x8] sm:$0xf0] }
 0x179   : > { %1100 = vmatpush.bf16.msra.mxu1 %v2097_v19 }
 0x17a   : > { %890 = vadd.xlane.f32.xlu0 %v884_v36  ;;  %886 = vadd.xlane.f32.xlu2 %v882_v37 }
 0x17b   : > { %v866_v38 = vpop.xlane.xlu1 %865  ;;  %v862_v39 = vpop.xlane.xlu0 %861 }
 0x17c   : > { %v3009_v40 = vmul.f32 %v2990_v29, %v866_v38  ;;  %v3012_v41 = vmul.f32 %v2990_v29, %v862_v39  ;;  %v2089_v38 = vor.u32 %v2204_v24, %v2086_v28  ;;  %v2202_v39 = vld [vmem:[%s2978_s10 + $0x4] sm:$0xf] }
 0x17d   : > { %v2081_v48 = vor.u32 %v2202_v39, %v2078_v33 }
 0x17e   : > { %v3015_v42 = vsub.f32 %v856_v21, %v3009_v40  ;;  %v3018_v43 = vsub.f32 %v854_v22, %v3012_v41  ;;  %v900_v21 = vmul.f32 %v896_v13, %v2993_v32  ;;  %v2084_v22 = vld [vmem:[%s2978_s10 + $0x10] sm:$0xf]  ;;  %v895_v46 = vmul.f32 96.0, %v3012_v41  ;;  %1101 = vmatpush.bf16.msra.mxu1 %v2089_v38 }
 0x17f   : > { %v2085_v27 = vor.u32 %v2205_v23, %v2084_v22 }
 0x180   : > { %v885_v44 = vmul.f32 %v3015_v42, %v3015_v42  ;;  %v883_v45 = vmul.f32 %v3018_v43, %v3018_v43  ;;  %v899_v52 = vmul.f32 %v895_v46, %v3012_v41 }
 0x181   : > { %1082 = vmatpush.bf16.msra.mxu0 %v2085_v27 }
 0x182   : > { %892 = vadd.xlane.f32.xlu1 %v885_v44  ;;  %888 = vadd.xlane.f32.xlu2 %v883_v45  ;;  %v897_v44 = vmul.f32 96.0, %v3009_v40 }
 0x183   : > { %1102 = vmatpush.bf16.msra.mxu1 %v2081_v48 }
 0x184   : > { %v901_v51 = vmul.f32 %v897_v44, %v3009_v40 }
 0x185   : > { %1083 = vmatpush.bf16.msra.mxu0 %v2077_v47 }
 0x1ed   : > { %v887_v25 = vpop.xlane.xlu2 %886  ;;  %v891_v26 = vpop.xlane.xlu0 %890 }
 0x1ee   : > { %v902_v36 = vsub.f32 %v887_v25, %v898_v20  ;;  %v904_v37 = vsub.f32 %v891_v26, %v900_v21  ;;  %v2360_v25 = vld [vmem:[%s602_s8] ss:$0 sm:$0xff] }
 0x1f0   : > { %v906_v32 = vmul.f32 %v902_v36, %v2990_v29  ;;  %v908_v45 = vmul.f32 %v904_v37, %v2990_v29 }
 0x1f2   : > { %v910_v49 = vadd.f32 1e-05, %v906_v32  ;;  %v912_v50 = vadd.f32 1e-05, %v908_v45  ;;  %v3077_v32 = vld [vmem:[%s2959_s24] sm:$0x3] }
 0x1f4   : > { %2366 = vrsqrt.f32 %v910_v49  ;;  %vm940_vm3 = vweird.f32 %v912_v50  ;;  %vm920_vm4 = vweird.f32 %v910_v49 }
 0x1f5   : > { %2368 = vrsqrt.f32 %v912_v50  ;;  %v893_v53 = vpop.xlane.xlu1 %892  ;;  %v889_v54 = vpop.xlane.xlu2 %888 }
 0x1f6   : > { %v905_v55 = vsub.f32 %v893_v53, %v901_v51  ;;  %v903_v56 = vsub.f32 %v889_v54, %v899_v52 }
 0x1f8   : > { %v909_v57 = vmul.f32 %v905_v55, %v2990_v29  ;;  %v907_v58 = vmul.f32 %v903_v56, %v2990_v29 }
 0x1fa   : > { %v2367_v59 = vpop.eup %2366  ;;  %v913_v60 = vadd.f32 1e-05, %v909_v57  ;;  %v911_v61 = vadd.f32 1e-05, %v907_v58 }
 0x1fb   : > { %v2369_v62 = vpop.eup %2368  ;;  %v915_v63 = vmul.f32 %v2367_v59, %v910_v49  ;;  %vm921_vm2 = vweird.f32 %v2367_v59 }
 0x1fc   : > { %v935_v0 = vmul.f32 %v2369_v62, %v912_v50  ;;  %2370 = vrsqrt.f32 %v913_v60  ;;  %vm941_vm1 = vweird.f32 %v2369_v62  ;;  %vm922_vm6 = vmor %vm920_vm4, %vm921_vm2  ;;  %vm950_vm9 = vweird.f32 %v913_v60 }
 0x1fd   : > { %v916_v40 = vmul.f32 %v2367_v59, %v915_v63  ;;  %2372 = vrsqrt.f32 %v911_v61  ;;  %vm942_vm5 = vmor %vm940_vm3, %vm941_vm1  ;;  %vm930_vm11 = vweird.f32 %v911_v61 }
 0x1fe   : > { %v936_v41 = vmul.f32 %v2369_v62, %v935_v0 }
 0x1ff   : > { %v917_v1 = vmul.f32 0.5, %v916_v40 }
 0x200   : > { %v937_v2 = vmul.f32 0.5, %v936_v41 }
 0x201   : > { %v918_v3 = vsub.f32 1.5, %v917_v1 }
 0x202   : > { %v2371_v4 = vpop.eup %2370  ;;  %v938_v5 = vsub.f32 1.5, %v937_v2 }
 0x203   : > { %v2373_v6 = vpop.eup %2372  ;;  %v945_v7 = vmul.f32 %v2371_v4, %v913_v60  ;;  %v919_v8 = vmul.f32 %v2367_v59, %v918_v3  ;;  %vm951_vm7 = vweird.f32 %v2371_v4 }
 0x204   : > { %v939_v29 = vmul.f32 %v2369_v62, %v938_v5  ;;  %v925_v9 = vmul.f32 %v2373_v6, %v911_v61  ;;  %vm931_vm8 = vweird.f32 %v2373_v6  ;;  %vm952_vm10 = vmor %vm950_vm9, %vm951_vm7 }
 0x205   : > { %v946_v10 = vmul.f32 %v2371_v4, %v945_v7  ;;  %v923_v15 = vsel %vm922_vm6, %v2367_v59, %v919_v8  ;;  %vm932_vm12 = vmor %vm930_vm11, %vm931_vm8 }
 0x206   : > { %v926_v11 = vmul.f32 %v2373_v6, %v925_v9  ;;  %v943_v13 = vsel %vm942_vm5, %v2369_v62, %v939_v29  ;;  %v954_v21 = vmul.f32 %v923_v15, %v3002_v35 }
 0x207   : > { %v947_v12 = vmul.f32 0.5, %v946_v10  ;;  %v956_v19 = vmul.f32 %v943_v13, %v2999_v34 }
 0x208   : > { %v927_v14 = vmul.f32 0.5, %v926_v11  ;;  %v961_v30 = vmul.f32 %v2359_v18, %v954_v21 }
 0x209   : > { %v948_v16 = vsub.f32 1.5, %v947_v12  ;;  %v963_v27 = vmul.f32 %v2359_v18, %v956_v19 }
 0x20a   : > { %v928_v17 = vsub.f32 1.5, %v927_v14  ;;  %v968_v35 = vadd.f32 %v2360_v25, %v961_v30 }
 0x20b   : > { %v949_v20 = vmul.f32 %v2371_v4, %v948_v16  ;;  %v970_v36 = vadd.f32 %v2360_v25, %v963_v27 }
 0x20c   : > { %v929_v22 = vmul.f32 %v2373_v6, %v928_v17 }
 0x20d   : > { %v953_v23 = vsel %vm952_vm10, %v2371_v4, %v949_v20 }
 0x20e   : > { %v933_v24 = vsel %vm932_vm12, %v2373_v6, %v929_v22  ;;  %v957_v26 = vmul.f32 %v953_v23, %v3015_v42  ;;  %v993_v42 = vperm.slane %v3077_v32, 1 }
 0x20f   : > { %v955_v28 = vmul.f32 %v933_v24, %v3018_v43 }
 0x210   : > { %v964_v34 = vmul.f32 %v2359_v18, %v957_v26 }
 0x211   : > { %v962_v31 = vmul.f32 %v2359_v18, %v955_v28 }
 0x212   : > { %v971_v37 = vadd.f32 %v2360_v25, %v964_v34 }
 0x213   : > { %v969_v38 = vadd.f32 %v2360_v25, %v962_v31 }
 0x214   : > { %v973_v39 = vpack.c.bf16 %v971_v37, %v970_v36 }
 0x215   : > { %v972_v33 = vpack.c.bf16 %v969_v38, %v968_v35 }
 0x217   : > { %1084 = vmatmul.bf16.vlgmr.msra.gmra.mxu0 %v972_v33  ;;  %1103 = vmatmul.bf16.vlgmr.msra.gmra.mxu1 %v972_v33 }
 0x227   : > { %1089 = vmatmul.bf16.gmra.mxu0 %v973_v39  ;;  %1108 = vmatmul.bf16.gmra.mxu1 %v973_v39 }
 0x294   : > { %v1104_v44 = vpop.f32.mrf.mxu1 }
 0x295   : > { %v3080_v45 = vadd.f32 %v1104_v44, %v993_v42 }
 0x297   : > { %v3083_v46 = vmul.f32 0.70710677, %v3080_v45 }
 0x299   : > { %v1302_v47 = vmul.f32 %v3083_v46, %v3083_v46 }
 0x29b   : > { %v3089_v50 = vmin.f32 %v1302_v47, 16.0 }
 0x29c   : > { %v1106_v43 = vpop.f32.mrf.mxu1 }
 0x29d   : > { %v3087_v48 = vadd.f32 %v1106_v43, %v993_v42  ;;  %v1315_v52 = vmul.f32 3.8918573e-05, %v3089_v50  ;;  %v1304_v54 = vmul.f32 2.1237322e-06, %v3089_v50 }
 0x29f   : > { %v3092_v51 = vmul.f32 0.70710677, %v3087_v48  ;;  %v1316_v57 = vadd.f32 0.001143296, %v1315_v52  ;;  %v1305_v59 = vadd.f32 0.00028619796, %v1304_v54 }
 0x2a1   : > { %v1342_v53 = vmul.f32 %v3092_v51, %v3092_v51  ;;  %v1317_v62 = vmul.f32 %v1316_v57, %v3089_v50  ;;  %v1306_v0 = vmul.f32 %v1305_v59, %v3089_v50 }
 0x2a3   : > { %v3100_v58 = vmin.f32 %v1342_v53, 16.0  ;;  %v1318_v1 = vadd.f32 0.014752088, %v1317_v62  ;;  %v1307_v4 = vadd.f32 0.0036580483, %v1306_v0 }
 0x2a4   : > { %v1109_v49 = vpop.f32.mrf.mxu1 }
 0x2a5   : > { %v3098_v55 = vadd.f32 %v1109_v49, %v993_v42  ;;  %v1344_v63 = vmul.f32 2.1237322e-06, %v3100_v58  ;;  %v1355_v2 = vmul.f32 3.8918573e-05, %v3100_v58  ;;  %v1319_v7 = vmul.f32 %v1318_v1, %v3089_v50 }
 0x2a6   : > { %v1308_v11 = vmul.f32 %v1307_v4, %v3089_v50 }
 0x2a7   : > { %v3105_v61 = vmul.f32 0.70710677, %v3098_v55  ;;  %v1345_v3 = vadd.f32 0.00028619796, %v1344_v63  ;;  %v1356_v8 = vadd.f32 0.001143296, %v1355_v2 }
 0x2a8   : > { %v1320_v9 = vadd.f32 0.112945676, %v1319_v7  ;;  %v1309_v19 = vadd.f32 0.05243302, %v1308_v11 }
 0x2a9   : > { %v1382_v41 = vmul.f32 %v3105_v61, %v3105_v61  ;;  %v1346_v29 = vmul.f32 %v1345_v3, %v3100_v58  ;;  %v1357_v10 = vmul.f32 %v1356_v8, %v3100_v58 }
 0x2aa   : > { %v1321_v14 = vmul.f32 %v1320_v9, %v3089_v50  ;;  %v1310_v30 = vmul.f32 %v1309_v19, %v3089_v50 }
 0x2ab   : > { %v3118_v6 = vmin.f32 %v1382_v41, 16.0  ;;  %v1358_v15 = vadd.f32 0.014752088, %v1357_v10  ;;  %v1347_v17 = vadd.f32 0.0036580483, %v1346_v29 }
 0x2ac   : > { %v1111_v56 = vpop.f32.mrf.mxu1  ;;  %v1322_v18 = vadd.f32 0.4994258, %v1321_v14  ;;  %v1311_v39 = vadd.f32 0.18741608, %v1310_v30 }
 0x2ad   : > { %v3102_v60 = vadd.f32 %v1111_v56, %v993_v42  ;;  %v1384_v13 = vmul.f32 2.1237322e-06, %v3118_v6  ;;  %v1395_v16 = vmul.f32 3.8918573e-05, %v3118_v6  ;;  %v1359_v21 = vmul.f32 %v1358_v15, %v3100_v58 }
 0x2ae   : > { %v1323_v23 = vmul.f32 %v1322_v18, %v3089_v50  ;;  %v1348_v27 = vmul.f32 %v1347_v17, %v3100_v58  ;;  %v1312_v57 = vmul.f32 %v1311_v39, %v3089_v50 }
 0x2af   : > { %v3111_v40 = vmul.f32 0.70710677, %v3102_v60  ;;  %v1385_v22 = vadd.f32 0.00028619796, %v1384_v13  ;;  %v1360_v24 = vadd.f32 0.112945676, %v1359_v21 }
 0x2b0   : > { %v1396_v25 = vadd.f32 0.001143296, %v1395_v16  ;;  %v1324_v28 = vadd.f32 1.0, %v1323_v23  ;;  %v1349_v38 = vadd.f32 0.05243302, %v1348_v27 }
 0x2b1   : > { %v1422_v5 = vmul.f32 %v3111_v40, %v3111_v40  ;;  %v1361_v31 = vmul.f32 %v1360_v24, %v3100_v58  ;;  %v1386_v35 = vmul.f32 %v1385_v22, %v3118_v6 }
 0x2b2   : > { %v1397_v36 = vmul.f32 %v1396_v25, %v3118_v6  ;;  %2374 = vrcp.f32 %v1324_v28  ;;  %v1350_v52 = vmul.f32 %v1349_v38, %v3100_v58  ;;  %v1336_v8 = vand.u32 2147483648, %v1324_v28 }
 0x2b3   : > { %v3124_v12 = vmin.f32 %v1422_v5, 16.0  ;;  %v1362_v44 = vadd.f32 0.4994258, %v1361_v31  ;;  %v1387_v47 = vadd.f32 0.0036580483, %v1386_v35  ;;  %vm1330_vm14 = vweird.f32 %v1324_v28 }
 0x2b4   : > { %v1398_v42 = vadd.f32 0.014752088, %v1397_v36  ;;  %v1351_v2 = vadd.f32 0.18741608, %v1350_v52  ;;  %v1313_v5 = vadd.f32 1.1283791, %v1312_v57 }
 0x2b5   : > { %v1424_v20 = vmul.f32 2.1237322e-06, %v3124_v12  ;;  %v1435_v26 = vmul.f32 3.8918573e-05, %v3124_v12  ;;  %v1363_v49 = vmul.f32 %v1362_v44, %v3100_v58  ;;  %v1388_v1 = vmul.f32 %v1387_v47, %v3118_v6 }
 0x2b6   : > { %v1399_v53 = vmul.f32 %v1398_v42, %v3118_v6  ;;  %v1334_v50 = vand.u32 2147483647, %v1324_v28  ;;  %v1352_v14 = vmul.f32 %v1351_v2, %v3100_v58  ;;  %v1337_v19 = vor.u32 1.1754944e-38, %v1336_v8 }
 0x2b7   : > { %v1425_v34 = vadd.f32 0.00028619796, %v1424_v20  ;;  %v1436_v37 = vadd.f32 0.001143296, %v1435_v26  ;;  %v1364_v62 = vadd.f32 1.0, %v1363_v49  ;;  %v1314_v21 = vmul.f32 %v1313_v5, %v3083_v46 }
 0x2b8   : > { %v2375_v56 = vpop.eup %2374  ;;  %v1400_v0 = vadd.f32 0.112945676, %v1399_v53  ;;  %v1389_v11 = vadd.f32 0.05243302, %v1388_v1  ;;  %vm1335_vm0 = vcmp.eq.f32.partialorder %v1334_v50, 8.507059e+37  ;;  %v1294_v38 = vmul.f32 0.5, %v3080_v45 }
 0x2b9   : > { %v1426_v33 = vmul.f32 %v1425_v34, %v3124_v12  ;;  %v1437_v43 = vmul.f32 %v1436_v37, %v3124_v12  ;;  %v1326_v63 = vmul.f32 %v2375_v56, %v1324_v28  ;;  %2376 = vrcp.f32 %v1364_v62 }
 0x2ba   : > { %v1401_v4 = vmul.f32 %v1400_v0, %v3118_v6  ;;  %vm1331_vm13 = vweird.f32 %v2375_v56  ;;  %v1390_v24 = vmul.f32 %v1389_v11, %v3118_v6  ;;  %v1353_v27 = vadd.f32 1.1283791, %v1352_v14 }
 0x2bb   : > { %v1438_v54 = vadd.f32 0.014752088, %v1437_v43  ;;  %v1427_v59 = vadd.f32 0.0036580483, %v1426_v33  ;;  %v1327_v3 = vsub.f32 1.0, %v1326_v63  ;;  %vm1332_vm15 = vmor %vm1330_vm14, %vm1331_vm13  ;;  %v1376_v36 = vand.u32 2147483648, %v1364_v62 }
 0x2bc   : > { %v1402_v10 = vadd.f32 0.4994258, %v1401_v4  ;;  %v1374_v31 = vand.u32 2147483647, %v1364_v62  ;;  %v1391_v39 = vadd.f32 0.18741608, %v1390_v24  ;;  %vm1370_vm2 = vweird.f32 %v1364_v62 }
 0x2bd   : > { %v1439_v41 = vmul.f32 %v1438_v54, %v3124_v12  ;;  %v1428_v7 = vmul.f32 %v1427_v59, %v3124_v12  ;;  %v1328_v9 = vmul.f32 %v2375_v56, %v1327_v3  ;;  %v1377_v43 = vor.u32 1.1754944e-38, %v1376_v36 }
 0x2be   : > { %v1403_v16 = vmul.f32 %v1402_v10, %v3118_v6  ;;  %v1354_v47 = vmul.f32 %v1353_v27, %v3092_v51  ;;  %vm1375_vm4 = vcmp.eq.f32.partialorder %v1374_v31, 8.507059e+37  ;;  %v1392_v54 = vmul.f32 %v1391_v39, %v3118_v6 }
 0x2bf   : > { %v1440_v29 = vadd.f32 0.112945676, %v1439_v41  ;;  %v1329_v15 = vadd.f32 %v2375_v56, %v1328_v9  ;;  %v2377_v17 = vpop.eup %2376  ;;  %v1429_v18 = vadd.f32 0.05243302, %v1428_v7  ;;  %v1295_v41 = vmul.f32 0.5, %v3087_v48 }
 0x2c0   : > { %v1366_v23 = vmul.f32 %v2377_v17, %v1364_v62  ;;  %v1404_v26 = vadd.f32 1.0, %v1403_v16  ;;  %vm1371_vm1 = vweird.f32 %v2377_v17  ;;  %v1393_v51 = vadd.f32 1.1283791, %v1392_v54 }
 0x2c1   : > { %v1441_v13 = vmul.f32 %v1440_v29, %v3124_v12  ;;  %v1333_v22 = vsel %vm1332_vm15, %v2375_v56, %v1329_v15  ;;  %v1430_v34 = vmul.f32 %v1429_v18, %v3124_v12  ;;  %vm1372_vm3 = vmor %vm1370_vm2, %vm1371_vm1  ;;  %v2713_v27 = vmov 64.0  }
 0x2c2   : > { %v1338_v25 = vsel %vm1335_vm0, %v1337_v19, %v1333_v22  ;;  %v1367_v30 = vsub.f32 1.0, %v1366_v23  ;;  %2378 = vrcp.f32 %v1404_v26  ;;  %v1416_v1 = vand.u32 2147483648, %v1404_v26 }
 0x2c3   : > { %v1442_v20 = vadd.f32 0.4994258, %v1441_v13  ;;  %v1339_v28 = vmul.f32 %v1338_v25, %v1314_v21  ;;  %v1431_v42 = vadd.f32 0.18741608, %v1430_v34  ;;  %v1414_v5 = vand.u32 2147483647, %v1404_v26 }
 0x2c4   : > { %v1368_v35 = vmul.f32 %v2377_v17, %v1367_v30  ;;  %vm1410_vm6 = vweird.f32 %v1404_v26  ;;  %v1394_v48 = vmul.f32 %v1393_v51, %v3105_v61  ;;  %v1296_v22 = vmul.f32 0.5, %v3098_v55 }
 0x2c5   : > { %v1443_v58 = vmul.f32 %v1442_v20, %v3124_v12  ;;  %v2142_v37 = vclamps-f32 %v1339_v28, 1.0  ;;  %v1432_v59 = vmul.f32 %v1431_v42, %v3124_v12  ;;  %v1417_v12 = vor.u32 1.1754944e-38, %v1416_v1 }
 0x2c6   : > { %v1369_v44 = vadd.f32 %v2377_v17, %v1368_v35  ;;  %vm1415_vm9 = vcmp.eq.f32.partialorder %v1414_v5, 8.507059e+37  ;;  %v1297_v25 = vmul.f32 0.5, %v3102_v60 }
 0x2c7   : > { %v1444_v46 = vadd.f32 1.0, %v1443_v58  ;;  %v1462_v33 = vadd.f32 1.0, %v2142_v37  ;;  %v1433_v6 = vadd.f32 1.1283791, %v1432_v59 }
 0x2c8   : > { %v1373_v52 = vsel %vm1372_vm3, %v2377_v17, %v1369_v44  ;;  %v2379_v53 = vpop.eup %2378 }
 0x2c9   : > { %2380 = vrcp.f32 %v1444_v46  ;;  %v3157_v49 = vmul.f32 %v1462_v33, %v1294_v38  ;;  %v1378_v56 = vsel %vm1375_vm4, %v1377_v43, %v1373_v52  ;;  %v1406_v57 = vmul.f32 %v2379_v53, %v1404_v26 }
 0x2ca   : > { %v1379_v45 = vmul.f32 %v1378_v56, %v1354_v47  ;;  %vm1411_vm5 = vweird.f32 %v2379_v53  ;;  %v1456_v9 = vand.u32 2147483648, %v1444_v46  ;;  %v1454_v10 = vand.u32 2147483647, %v1444_v46 }
 0x2cb   : > { %1472 = vadd.xlane.f32.xlu2 %v3157_v49  ;;  %v1407_v0 = vsub.f32 1.0, %v1406_v57  ;;  %vm1412_vm7 = vmor %vm1410_vm6, %vm1411_vm5  ;;  %vm1450_vm10 = vweird.f32 %v1444_v46  ;;  %v1434_v17 = vmul.f32 %v1433_v6, %v3111_v40  ;;  %2382 = vrcp.f32 %v2713_v27  ;;  %v2362_v27 = vld [vmem:[%s621_s1] ss:$0 sm:$0xff] }
 0x2cc   : > { %v2143_v63 = vclamps-f32 %v1379_v45, 1.0  ;;  %v1457_v16 = vor.u32 1.1754944e-38, %v1456_v9  ;;  %vm1455_vm12 = vcmp.eq.f32.partialorder %v1454_v10, 8.507059e+37 }
 0x2cd   : > { %v1408_v4 = vmul.f32 %v2379_v53, %v1407_v0 }
 0x2ce   : > { %v1463_v3 = vadd.f32 1.0, %v2143_v63 }
 0x2cf   : > { %v2381_v62 = vpop.eup %2380  ;;  %v1409_v29 = vadd.f32 %v2379_v53, %v1408_v4 }
 0x2d0   : > { %v1446_v2 = vmul.f32 %v2381_v62, %v1444_v46  ;;  %v1467_v8 = vmul.f32 %v1463_v3, %v1295_v41  ;;  %vm1451_vm8 = vweird.f32 %v2381_v62 }
 0x2d1   : > { %v1413_v11 = vsel %vm1412_vm7, %v2379_v53, %v1409_v29  ;;  %vm1452_vm11 = vmor %vm1450_vm10, %vm1451_vm8  ;;  %v2383_v28 = vpop.eup %2382  ;;  %vm1614_vm10 = vcmask 130048  }
 0x2d2   : > { %v1447_v7 = vsub.f32 1.0, %v1446_v2  ;;  %1474 = vadd.xlane.f32.xlu0 %v1467_v8  ;;  %v1418_v13 = vsel %vm1415_vm9, %v1417_v12, %v1413_v11  ;;  %v1481_v40 = vmul.f32 64.0, %v2383_v28  ;;  %vm1485_vm13 = vweird.f32 %v2383_v28 }
 0x2d3   : > { %v1419_v15 = vmul.f32 %v1418_v13, %v1394_v48 }
 0x2d4   : > { %v1448_v50 = vmul.f32 %v2381_v62, %v1447_v7  ;;  %v1482_v30 = vsub.f32 1.0, %v1481_v40  ;;  %v1592_v40 = vld [vmem:[%s2971_s22 + $0x8] sm:$0xff] }
 0x2d5   : > { %v2144_v19 = vclamps-f32 %v1419_v15, 1.0 }
 0x2d6   : > { %v1449_v14 = vadd.f32 %v2381_v62, %v1448_v50  ;;  %v1483_v34 = vmul.f32 %v2383_v28, %v1482_v30 }
 0x2d7   : > { %v1464_v23 = vadd.f32 1.0, %v2144_v19 }
 0x2d8   : > { %v1453_v18 = vsel %vm1452_vm11, %v2381_v62, %v1449_v14  ;;  %v1484_v31 = vadd.f32 %v2383_v28, %v1483_v34 }
 0x2d9   : > { %v1458_v20 = vsel %vm1455_vm12, %v1457_v16, %v1453_v18  ;;  %v1468_v24 = vmul.f32 %v1464_v23, %v1296_v22  ;;  %v2361_v23 = vld [vmem:[%s3426_s25] ss:$0 sm:$0xff] }
 0x2da   : > { %v1459_v21 = vmul.f32 %v1458_v20, %v1434_v17  ;;  %v1486_v36 = vsel %vm1485_vm13, %v2383_v28, %v1484_v31  ;;  %v1591_v28 = vld [vmem:[%s2971_s22] sm:$0xff] }
 0x2db   : > { %1476 = vadd.xlane.f32.xlu1 %v1468_v24 }
 0x2dc   : > { %v2145_v61 = vclamps-f32 %v1459_v21, 1.0 }
 0x2de   : > { %v1465_v26 = vadd.f32 1.0, %v2145_v61 }
 0x2e0   : > { %v1469_v58 = vmul.f32 %v1465_v26, %v1297_v25  ;;  %v2714_v25 = vmov 0  }
 0x2e1   : > { %2356 = vset.pattern.permute.xlu1 %v2714_v25  ;;  %2357 = vset.pattern.permute.xlu2 %v2714_v25 }
 0x2e2   : > { %1478 = vadd.xlane.f32.xlu2 %v1469_v58  ;;  %2358 = vset.pattern.permute.xlu0 %v2714_v25 }
 0x33e   : > { %v1473_v37 = vpop.xlane.xlu2 %1472 }
 0x33f   : > { %v1487_v55 = vmul.f32 %v1486_v36, %v1473_v37 }
 0x341   : > { %v1491_v35 = vsub.f32 %v3157_v49, %v1487_v55  ;;  %v1507_v56 = vmul.f32 64.0, %v1487_v55 }
 0x343   : > { %v1495_v46 = vmul.f32 %v1491_v35, %v1491_v35  ;;  %v1511_v45 = vmul.f32 %v1507_v56, %v1487_v55 }
 0x345   : > { %1499 = vadd.xlane.f32.xlu0 %v1495_v46  ;;  %v1475_v60 = vpop.xlane.xlu0 %1474 }
 0x346   : > { %v1488_v38 = vmul.f32 %v1486_v36, %v1475_v60 }
 0x348   : > { %v3168_v39 = vsub.f32 %v1467_v8, %v1488_v38  ;;  %v1508_v63 = vmul.f32 64.0, %v1488_v38 }
 0x34a   : > { %v1496_v33 = vmul.f32 %v3168_v39, %v3168_v39  ;;  %v1512_v41 = vmul.f32 %v1508_v63, %v1488_v38 }
 0x34c   : > { %1501 = vadd.xlane.f32.xlu1 %v1496_v33 }
 0x34e   : > { %v1477_v44 = vpop.xlane.xlu1 %1476 }
 0x34f   : > { %v1489_v42 = vmul.f32 %v1486_v36, %v1477_v44 }
 0x351   : > { %v3172_v43 = vsub.f32 %v1468_v24, %v1489_v42  ;;  %v1509_v5 = vmul.f32 64.0, %v1489_v42 }
 0x353   : > { %v1497_v53 = vmul.f32 %v3172_v43, %v3172_v43  ;;  %v1513_v29 = vmul.f32 %v1509_v5, %v1489_v42 }
 0x355   : > { %v1479_v47 = vpop.xlane.xlu2 %1478  ;;  %1503 = vadd.xlane.f32.xlu2 %v1497_v53 }
 0x356   : > { %v1490_v52 = vmul.f32 %v1486_v36, %v1479_v47 }
 0x358   : > { %v3176_v49 = vsub.f32 %v1469_v58, %v1490_v52  ;;  %v1510_v8 = vmul.f32 64.0, %v1490_v52 }
 0x35a   : > { %v1498_v54 = vmul.f32 %v3176_v49, %v3176_v49  ;;  %v1514_v48 = vmul.f32 %v1510_v8, %v1490_v52 }
 0x35c   : > { %1505 = vadd.xlane.f32.xlu0 %v1498_v54 }
 0x365   : > { %1595 = vperm.xlu1 %2356, %v1591_v28  }
 0x36d   : > { %1600 = vperm.xlu2 %2357, %v1592_v40  }
 0x3b8   : > { %v1500_v57 = vpop.xlane.xlu0 %1499 }
 0x3b9   : > { %v1515_v59 = vsub.f32 %v1500_v57, %v1511_v45 }
 0x3bb   : > { %v1519_v62 = vmul.f32 %v1515_v59, %v1486_v36 }
 0x3bd   : > { %v1523_v0 = vadd.f32 1e-05, %v1519_v62  ;;  %v2226_v62 = vld [vmem:[%s2981_s12 + $0x38] sm:$0xff] }
 0x3bf   : > { %2384 = vrsqrt.f32 %v1523_v0  ;;  %v1502_v51 = vpop.xlane.xlu1 %1501  ;;  %vm1533_vm15 = vweird.f32 %v1523_v0 }
 0x3c0   : > { %v1516_v1 = vsub.f32 %v1502_v51, %v1512_v41  ;;  %v2218_v51 = vld [vmem:[%s2965_s3] sm:$0xff] }
 0x3c2   : > { %v1520_v2 = vmul.f32 %v1516_v1, %v1486_v36 }
 0x3c4   : > { %v1524_v4 = vadd.f32 1e-05, %v1520_v2 }
 0x3c5   : > { %v2385_v3 = vpop.eup %2384 }
 0x3c6   : > { %v1528_v6 = vmul.f32 %v2385_v3, %v1523_v0  ;;  %2386 = vrsqrt.f32 %v1524_v4  ;;  %vm1534_vm14 = vweird.f32 %v2385_v3  ;;  %vm1543_vm2 = vweird.f32 %v1524_v4 }
 0x3c7   : > { %vm1535_vm0 = vmor %vm1533_vm15, %vm1534_vm14 }
 0x3c8   : > { %v1529_v7 = vmul.f32 %v2385_v3, %v1528_v6  ;;  %v1504_v12 = vpop.xlane.xlu2 %1503 }
 0x3c9   : > { %v1517_v50 = vsub.f32 %v1504_v12, %v1513_v29 }
 0x3ca   : > { %v1530_v9 = vmul.f32 0.5, %v1529_v7 }
 0x3cb   : > { %v1521_v13 = vmul.f32 %v1517_v50, %v1486_v36  ;;  %v1085_v50 = vpop.f32.mrf.mxu0 }
 0x3cc   : > { %v1531_v10 = vsub.f32 1.5, %v1530_v9  ;;  %v2387_v11 = vpop.eup %2386 }
 0x3cd   : > { %v1538_v15 = vmul.f32 %v2387_v11, %v1524_v4  ;;  %v1525_v18 = vadd.f32 1e-05, %v1521_v13  ;;  %vm1544_vm1 = vweird.f32 %v2387_v11  ;;  %v2225_v4 = vld [vmem:[%s2981_s12 + $0x30] sm:$0xff] }
 0x3ce   : > { %v1532_v17 = vmul.f32 %v2385_v3, %v1531_v10  ;;  %vm1545_vm3 = vmor %vm1543_vm2, %vm1544_vm1  ;;  %v992_v10 = vperm.slane %v3077_v32, 0 }
 0x3cf   : > { %v1506_v14 = vpop.xlane.xlu0 %1505  ;;  %v1539_v19 = vmul.f32 %v2387_v11, %v1538_v15  ;;  %2388 = vrsqrt.f32 %v1525_v18  ;;  %vm1553_vm5 = vweird.f32 %v1525_v18 }
 0x3d0   : > { %v1518_v16 = vsub.f32 %v1506_v14, %v1514_v48  ;;  %v1536_v21 = vsel %vm1535_vm0, %v2385_v3, %v1532_v17  ;;  %v3198_v48 = vadd.f32 %v1085_v50, %v992_v10 }
 0x3d1   : > { %v1567_v22 = vmul.f32 %v1536_v21, %v1491_v35  ;;  %v1540_v61 = vmul.f32 0.5, %v1539_v19 }
 0x3d2   : > { %v1522_v20 = vmul.f32 %v1518_v16, %v1486_v36 }
 0x3d3   : > { %v1541_v26 = vsub.f32 1.5, %v1540_v61  ;;  %v1574_v58 = vmul.f32 %v2361_v23, %v1567_v22 }
 0x3d4   : > { %v1526_v24 = vadd.f32 1e-05, %v1522_v20 }
 0x3d5   : > { %v1542_v30 = vmul.f32 %v2387_v11, %v1541_v26  ;;  %v2389_v34 = vpop.eup %2388  ;;  %v1581_v55 = vadd.f32 %v2362_v27, %v1574_v58 }
 0x3d6   : > { %2390 = vrsqrt.f32 %v1526_v24  ;;  %v1548_v31 = vmul.f32 %v2389_v34, %v1525_v18  ;;  %vm1554_vm4 = vweird.f32 %v2389_v34  ;;  %vm1563_vm8 = vweird.f32 %v1526_v24 }
 0x3d7   : > { %v1546_v36 = vsel %vm1545_vm3, %v2387_v11, %v1542_v30  ;;  %v1585_v47 = vpack.c.bf16 %v1581_v55, %v1581_v55  ;;  %vm1555_vm6 = vmor %vm1553_vm5, %vm1554_vm4  ;;  %v3201_v11 = vmul.f32 0.70710677, %v3198_v48 }
 0x3d8   : > { %v1568_v37 = vmul.f32 %v1546_v36, %v3168_v39  ;;  %v1549_v46 = vmul.f32 %v2389_v34, %v1548_v31 }
 0x3d9   : > { %v1610_v39 = vunpack.c.l.b16 %v1585_v47  ;;  %v1122_v15 = vmul.f32 %v3201_v11, %v3201_v11 }
 0x3da   : > { %v1575_v38 = vmul.f32 %v2361_v23, %v1568_v37  ;;  %v1550_v33 = vmul.f32 0.5, %v1549_v46 }
 0x3db   : > { %v3210_v17 = vmin.f32 %v1122_v15, 16.0 }
 0x3dc   : > { %v2391_v35 = vpop.eup %2390  ;;  %v1582_v42 = vadd.f32 %v2362_v27, %v1575_v38  ;;  %v1551_v52 = vsub.f32 1.5, %v1550_v33 }
 0x3dd   : > { %v1558_v60 = vmul.f32 %v2391_v35, %v1526_v24  ;;  %vm1564_vm7 = vweird.f32 %v2391_v35  ;;  %v1135_v20 = vmul.f32 3.8918573e-05, %v3210_v17 }
 0x3de   : > { %v1586_v54 = vpack.c.bf16 %v1582_v42, %v1582_v42  ;;  %v1552_v56 = vmul.f32 %v2389_v34, %v1551_v52  ;;  %vm1565_vm9 = vmor %vm1563_vm8, %vm1564_vm7 }
 0x3df   : > { %v1559_v44 = vmul.f32 %v2391_v35, %v1558_v60  ;;  %v1136_v61 = vadd.f32 0.001143296, %v1135_v20 }
 0x3e0   : > { %v1611_v57 = vunpack.c.l.b16 %v1586_v54  ;;  %v1556_v59 = vsel %vm1555_vm6, %v2389_v34, %v1552_v56  ;;  %v1124_v54 = vmul.f32 2.1237322e-06, %v3210_v17 }
 0x3e1   : > { %v1560_v53 = vmul.f32 0.5, %v1559_v44  ;;  %v1569_v41 = vmul.f32 %v1556_v59, %v3172_v43  ;;  %v1137_v58 = vmul.f32 %v1136_v61, %v3210_v17 }
 0x3e2   : > { %v1612_v63 = vpack.c.b16 %v1611_v57, %v1610_v39  ;;  %v1125_v59 = vadd.f32 0.00028619796, %v1124_v54 }
 0x3e3   : > { %v1561_v45 = vsub.f32 1.5, %v1560_v53  ;;  %v1576_v2 = vmul.f32 %v2361_v23, %v1569_v41  ;;  %v1138_v30 = vadd.f32 0.014752088, %v1137_v58 }
 0x3e4   : > { %1625 = vmatpush.bf16.msra.mxu2 %v1612_v63 }
 0x3e5   : > { %v1562_v0 = vmul.f32 %v2391_v35, %v1561_v45  ;;  %v1583_v5 = vadd.f32 %v2362_v27, %v1576_v2  ;;  %v1139_v37 = vmul.f32 %v1138_v30, %v3210_v17 }
 0x3e7   : > { %v1566_v1 = vsel %vm1565_vm9, %v2391_v35, %v1562_v0  ;;  %2150 = vmatmul.msk.bf16.vlgmr.msra.gmra.mxu2 %vm1614_vm10, %v2218_v51  ;;  %v1587_v8 = vpack.c.bf16 %v1583_v5, %v1583_v5  ;;  %v1140_v60 = vadd.f32 0.112945676, %v1139_v37 }
 0x3e8   : > { %v1570_v3 = vmul.f32 %v1566_v1, %v3176_v49  ;;  %1752 = vmatpush.bf16.msrb.mxu2 %v2226_v62  ;;  %v1087_v49 = vpop.f32.mrf.mxu0  ;;  %v1126_v1 = vmul.f32 %v1125_v59, %v3210_v17 }
 0x3e9   : > { %v1644_v9 = vunpack.c.l.b16 %v1587_v8  ;;  %v3203_v13 = vadd.f32 %v1087_v49, %v992_v10  ;;  %v1141_v42 = vmul.f32 %v1140_v60, %v3210_v17 }
 0x3ea   : > { %v1577_v6 = vmul.f32 %v2361_v23, %v1570_v3 }
 0x3eb   : > { %v3208_v16 = vmul.f32 0.70710677, %v3203_v13  ;;  %v1142_v56 = vadd.f32 0.4994258, %v1141_v42 }
 0x3ec   : > { %v1584_v7 = vadd.f32 %v2362_v27, %v1577_v6  ;;  %1753 = vmatpush.bf16.msrb.mxu2 %v2225_v4 }
 0x3ed   : > { %v1162_v18 = vmul.f32 %v3208_v16, %v3208_v16 }
 0x3ee   : > { %v1588_v29 = vpack.c.bf16 %v1584_v7, %v1584_v7  ;;  %v1127_v7 = vadd.f32 0.0036580483, %v1126_v1 }
 0x3ef   : > { %v3217_v21 = vmin.f32 %v1162_v18, 16.0 }
 0x3f0   : > { %v1645_v43 = vunpack.c.l.b16 %v1588_v29  ;;  %v1090_v14 = vpop.f32.mrf.mxu0  ;;  %v1128_v50 = vmul.f32 %v1127_v7, %v3210_v17 }
 0x3f1   : > { %v3214_v32 = vadd.f32 %v1090_v14, %v992_v10  ;;  %v1175_v24 = vmul.f32 3.8918573e-05, %v3217_v21  ;;  %v1164_v63 = vmul.f32 2.1237322e-06, %v3217_v21 }
 0x3f2   : > { %v1646_v12 = vpack.c.b16 %v1645_v43, %v1644_v9  ;;  %v1129_v20 = vadd.f32 0.05243302, %v1128_v50 }
 0x3f3   : > { %v3220_v22 = vmul.f32 0.70710677, %v3214_v32  ;;  %v1176_v27 = vadd.f32 0.001143296, %v1175_v24  ;;  %v1165_v3 = vadd.f32 0.00028619796, %v1164_v63 }
 0x3f4   : > { %1655 = vmatpush.bf16.msra.mxu3 %v1646_v12 }
 0x3f5   : > { %v1202_v25 = vmul.f32 %v3220_v22, %v3220_v22  ;;  %v1177_v34 = vmul.f32 %v1176_v27, %v3217_v21  ;;  %v1166_v8 = vmul.f32 %v1165_v3, %v3217_v21  ;;  %v2221_v3 = vld [vmem:[%s2981_s12 + $0x10] sm:$0xff] }
 0x3f7   : > { %2151 = vmatmul.msk.bf16.vlgmr.msra.gmra.mxu3 %vm1614_vm10, %v2218_v51  ;;  %v3231_v28 = vmin.f32 %v1202_v25, 16.0  ;;  %v1178_v55 = vadd.f32 0.014752088, %v1177_v34  ;;  %v1167_v49 = vadd.f32 0.0036580483, %v1166_v8  ;;  %v2224_v34 = vld [vmem:[%s2981_s12 + $0x28] sm:$0xff] }
 0x3f8   : > { %2235 = vmatpush.bf16.msrb.mxu3 %v2226_v62  ;;  %v1092_v19 = vpop.f32.mrf.mxu0  ;;  %v1143_v62 = vmul.f32 %v1142_v56, %v3210_v17  ;;  %1754 = vmatpush.bf16.msrb.mxu2 %v2224_v34 }
 0x3f9   : > { %v3222_v23 = vadd.f32 %v1092_v19, %v992_v10  ;;  %v1215_v31 = vmul.f32 3.8918573e-05, %v3231_v28  ;;  %v1179_v38 = vmul.f32 %v1178_v55, %v3217_v21  ;;  %v1204_v9 = vmul.f32 2.1237322e-06, %v3231_v28 }
 0x3fa   : > { %v3252_v2 = vadd.f32 1.0, %v1143_v62  ;;  %v1168_v61 = vmul.f32 %v1167_v49, %v3217_v21 }
 0x3fb   : > { %v3228_v26 = vmul.f32 0.70710677, %v3222_v23  ;;  %v1216_v35 = vadd.f32 0.001143296, %v1215_v31  ;;  %v1180_v47 = vadd.f32 0.112945676, %v1179_v38  ;;  %v1130_v31 = vmul.f32 %v1129_v20, %v3210_v17 }
 0x3fc   : > { %2236 = vmatpush.bf16.msrb.mxu3 %v2225_v4  ;;  %2392 = vrcp.f32 %v3252_v2  ;;  %v1205_v10 = vadd.f32 0.00028619796, %v1204_v9  ;;  %v1169_v37 = vadd.f32 0.05243302, %v1168_v61  ;;  %vm1150_vm12 = vweird.f32 %v3252_v2 }
 0x3fd   : > { %v1242_v40 = vmul.f32 %v3228_v26, %v3228_v26  ;;  %v1217_v33 = vmul.f32 %v1216_v35, %v3231_v28  ;;  %v1181_v45 = vmul.f32 %v1180_v47, %v3217_v21 }
 0x3fe   : > { %v1206_v24 = vmul.f32 %v1205_v10, %v3231_v28  ;;  %v1170_v42 = vmul.f32 %v1169_v37, %v3217_v21  ;;  %v2220_v10 = vld [vmem:[%s2981_s12 + $0x8] sm:$0xff] }
 0x3ff   : > { %v3237_v36 = vmin.f32 %v1242_v40, 16.0  ;;  %v1218_v52 = vadd.f32 0.014752088, %v1217_v33  ;;  %v1182_v0 = vadd.f32 0.4994258, %v1181_v45  ;;  %v2223_v33 = vld [vmem:[%s2981_s12 + $0x20] sm:$0xff] }
 0x400   : > { %v1207_v55 = vadd.f32 0.0036580483, %v1206_v24  ;;  %2237 = vmatpush.bf16.msrb.mxu3 %v2224_v34  ;;  %1755 = vmatpush.bf16.msrb.mxu2 %v2223_v33  ;;  %v2222_v45 = vld [vmem:[%s2981_s12 + $0x18] sm:$0xff]  ;;  %v1171_v59 = vadd.f32 0.18741608, %v1170_v42 }
 0x401   : > { %v1255_v46 = vmul.f32 3.8918573e-05, %v3237_v36  ;;  %v1219_v39 = vmul.f32 %v1218_v52, %v3231_v28  ;;  %v1183_v4 = vmul.f32 %v1182_v0, %v3217_v21  ;;  %v1244_v19 = vmul.f32 2.1237322e-06, %v3237_v36 }
 0x402   : > { %v3265_v18 = vpop.eup %2392  ;;  %v1172_v7 = vmul.f32 %v1171_v59, %v3217_v21 }
 0x403   : > { %v1256_v44 = vadd.f32 0.001143296, %v1255_v46  ;;  %v1220_v41 = vadd.f32 0.112945676, %v1219_v39  ;;  %v3258_v29 = vadd.f32 1.0, %v1183_v4  ;;  %v1146_v25 = vmul.f32 %v3265_v18, %v3252_v2 }
 0x404   : > { %v1245_v30 = vadd.f32 0.00028619796, %v1244_v19  ;;  %2238 = vmatpush.bf16.msrb.mxu3 %v2223_v33  ;;  %vm1151_vm11 = vweird.f32 %v3265_v18  ;;  %1756 = vmatpush.bf16.msrb.mxu2 %v2222_v45 }
 0x405   : > { %v1257_v53 = vmul.f32 %v1256_v44, %v3237_v36  ;;  %v1221_v5 = vmul.f32 %v1220_v41, %v3231_v28  ;;  %2394 = vrcp.f32 %v3258_v29  ;;  %v1147_v35 = vsub.f32 1.0, %v1146_v25  ;;  %vm3306_vm13 = vmor %vm1150_vm12, %vm1151_vm11 }
 0x406   : > { %v1246_v38 = vmul.f32 %v1245_v30, %v3237_v36  ;;  %v1131_v44 = vadd.f32 0.18741608, %v1130_v31  ;;  %vm1190_vm0 = vweird.f32 %v3258_v29  ;;  %v1194_v21 = vand.u32 2147483647, %v3258_v29 }
 0x407   : > { %v1258_v57 = vadd.f32 0.014752088, %v1257_v53  ;;  %v1222_v43 = vadd.f32 0.4994258, %v1221_v5  ;;  %v1148_v47 = vmul.f32 %v3265_v18, %v1147_v35  ;;  %v1208_v53 = vmul.f32 %v1207_v55, %v3231_v28 }
 0x408   : > { %v1247_v54 = vadd.f32 0.0036580483, %v1246_v38  ;;  %v1132_v39 = vmul.f32 %v1131_v44, %v3210_v17  ;;  %2239 = vmatpush.bf16.msrb.mxu3 %v2222_v45  ;;  %v1154_v17 = vand.u32 2147483647, %v3252_v2  ;;  %1757 = vmatpush.bf16.msrb.mxu2 %v2221_v3  ;;  %vm1195_vm2 = vcmp.eq.f32.partialorder %v1194_v21, 8.507059e+37  ;;  %v1596_v45 = vpop.permute.xlu1 %1595 }
 0x409   : > { %v1259_v51 = vmul.f32 %v1258_v57, %v3237_v36  ;;  %v1223_v14 = vmul.f32 %v1222_v43, %v3231_v28  ;;  %v1156_v57 = vand.u32 2147483648, %v3252_v2  ;;  %v1149_v62 = vadd.f32 %v3265_v18, %v1148_v47 }
 0x40a   : > { %v1209_v0 = vadd.f32 0.05243302, %v1208_v53  ;;  %v1133_v4 = vadd.f32 1.1283791, %v1132_v39  ;;  %v1196_v43 = vand.u32 2147483648, %v3258_v29  ;;  %vm1155_vm15 = vcmp.eq.f32.partialorder %v1154_v17, 8.507059e+37 }
 0x40b   : > { %v1260_v6 = vadd.f32 0.112945676, %v1259_v51  ;;  %v3272_v58 = vadd.f32 1.0, %v1223_v14  ;;  %v3275_v40 = vpop.eup %2394  ;;  %v1248_v51 = vmul.f32 %v1247_v54, %v3237_v36  ;;  %v1153_v8 = vsel %vm3306_vm13, %v3265_v18, %v1149_v62 }
 0x40c   : > { %v1186_v46 = vmul.f32 %v3275_v40, %v3258_v29  ;;  %vm1191_vm14 = vweird.f32 %v3275_v40  ;;  %v1210_v2 = vmul.f32 %v1209_v0, %v3231_v28  ;;  %2240 = vmatpush.bf16.msrb.mxu3 %v2221_v3  ;;  %v1173_v18 = vadd.f32 1.1283791, %v1172_v7  ;;  %1758 = vmatpush.bf16.msrb.mxu2 %v2220_v10  ;;  %v2219_v29 = vld [vmem:[%s2981_s12] sm:$0xff] }
 0x40d   : > { %v1261_v12 = vmul.f32 %v1260_v6, %v3237_v36  ;;  %2396 = vrcp.f32 %v3272_v58  ;;  %v1157_v6 = vor.u32 1.1754944e-38, %v1156_v57  ;;  %v1249_v50 = vadd.f32 0.05243302, %v1248_v51  ;;  %vm1192_vm1 = vmor %vm1190_vm0, %vm1191_vm14 }
 0x40e   : > { %v1187_v52 = vsub.f32 1.0, %v1186_v46  ;;  %v1211_v20 = vadd.f32 0.18741608, %v1210_v2  ;;  %v1197_v61 = vor.u32 1.1754944e-38, %v1196_v43  ;;  %v1174_v31 = vmul.f32 %v1173_v18, %v3208_v16 }
 0x40f   : > { %v1262_v15 = vadd.f32 0.4994258, %v1261_v12  ;;  %v1158_v14 = vsel %vm1155_vm15, %v1157_v6, %v1153_v8  ;;  %v1250_v25 = vmul.f32 %v1249_v50, %v3237_v36  ;;  %v1236_v38 = vand.u32 2147483648, %v3272_v58  ;;  %v1601_v8 = vpop.permute.xlu2 %1600 }
 0x410   : > { %v1188_v63 = vmul.f32 %v3275_v40, %v1187_v52  ;;  %2241 = vmatpush.bf16.msrb.mxu3 %v2220_v10  ;;  %1759 = vmatpush.bf16.msrb.mxu2 %v2219_v29  ;;  %vm1230_vm4 = vweird.f32 %v3272_v58  ;;  %v1234_v33 = vand.u32 2147483647, %v3272_v58  ;;  %v1114_v39 = vmul.f32 0.5, %v3198_v48 }
 0x411   : > { %v1263_v27 = vmul.f32 %v1262_v15, %v3237_v36  ;;  %v1134_v15 = vmul.f32 %v1133_v4, %v3201_v11  ;;  %v1212_v11 = vmul.f32 %v1211_v20, %v3231_v28  ;;  %v1251_v37 = vadd.f32 0.18741608, %v1250_v25 }
 0x412   : > { %v1189_v9 = vadd.f32 %v3275_v40, %v1188_v63  ;;  %v1237_v53 = vor.u32 1.1754944e-38, %v1236_v38  ;;  %vm1235_vm7 = vcmp.eq.f32.partialorder %v1234_v33, 8.507059e+37  ;;  %v1115_v3 = vmul.f32 0.5, %v3203_v13 }
 0x413   : > { %v3282_v60 = vadd.f32 1.0, %v1263_v27  ;;  %v3290_v56 = vpop.eup %2396  ;;  %v1159_v30 = vmul.f32 %v1158_v14, %v1134_v15  ;;  %v1213_v16 = vadd.f32 1.1283791, %v1212_v11  ;;  %v1252_v44 = vmul.f32 %v1251_v37, %v3237_v36 }
 0x414   : > { %v1226_v41 = vmul.f32 %v3290_v56, %v3272_v58  ;;  %v1193_v19 = vsel %vm1192_vm1, %v3275_v40, %v1189_v9  ;;  %2242 = vmatpush.bf16.msrb.mxu3 %v2219_v29  ;;  %vm1231_vm3 = vweird.f32 %v3290_v56  ;;  %v1116_v13 = vmul.f32 0.5, %v3214_v32 }
 0x415   : > { %2398 = vrcp.f32 %v3282_v60  ;;  %v1198_v34 = vsel %vm1195_vm2, %v1197_v61, %v1193_v19  ;;  %v2138_v35 = vclamps-f32 %v1159_v30, 1.0  ;;  %vm1232_vm5 = vmor %vm1230_vm4, %vm1231_vm3  ;;  %v1276_v54 = vand.u32 2147483648, %v3282_v60 }
 0x416   : > { %v1227_v12 = vsub.f32 1.0, %v1226_v41  ;;  %v1199_v46 = vmul.f32 %v1198_v34, %v1174_v31  ;;  %vm1270_vm8 = vweird.f32 %v3282_v60  ;;  %v1274_v58 = vand.u32 2147483647, %v3282_v60 }
 0x417   : > { %v1282_v47 = vadd.f32 1.0, %v2138_v35  ;;  %v1214_v36 = vmul.f32 %v1213_v16, %v3220_v22  ;;  %v1253_v57 = vadd.f32 1.1283791, %v1252_v44  ;;  %v1277_v41 = vor.u32 1.1754944e-38, %v1276_v54  ;;  %v2363_v54 = vld [vmem:[%s739_s0] ss:$0 sm:$0xff] }
 0x418   : > { %v1228_v24 = vmul.f32 %v3290_v56, %v1227_v12  ;;  %v2139_v52 = vclamps-f32 %v1199_v46, 1.0  ;;  %vm1275_vm10 = vcmp.eq.f32.partialorder %v1274_v58, 8.507059e+37  ;;  %v1117_v25 = vmul.f32 0.5, %v3222_v23 }
 0x419   : > { %v1286_v63 = vmul.f32 %v1282_v47, %v1114_v39  ;;  %v1254_v48 = vmul.f32 %v1253_v57, %v3228_v26  ;;  %v2400_v39 = vld [vmem:[#allocation12] sm:$0xff] }
 0x41a   : > { %v1229_v40 = vadd.f32 %v3290_v56, %v1228_v24  ;;  %v1283_v0 = vadd.f32 1.0, %v2139_v52 }
 0x41b   : > { %v3301_v1 = vpop.eup %2398  ;;  %v1290_v5 = vpack.c.bf16 %v1286_v63, %v1286_v63 }
 0x41c   : > { %v1266_v49 = vmul.f32 %v3301_v1, %v3282_v60  ;;  %v1233_v28 = vsel %vm1232_vm5, %v3290_v56, %v1229_v40  ;;  %vm1271_vm6 = vweird.f32 %v3301_v1  ;;  %v1287_v6 = vmul.f32 %v1283_v0, %v1115_v3 }
 0x41d   : > { %v1238_v56 = vsel %vm1235_vm7, %v1237_v53, %v1233_v28  ;;  %vm1272_vm9 = vmor %vm1270_vm8, %vm1271_vm6  ;;  %v1636_v43 = vunpack.c.l.bf16 %v1290_v5 }
 0x41e   : > { %v1267_v27 = vsub.f32 1.0, %v1266_v49  ;;  %v1239_v17 = vmul.f32 %v1238_v56, %v1214_v36  ;;  %v1291_v2 = vpack.c.bf16 %v1287_v6, %v1287_v6 }
 0x420   : > { %v1268_v55 = vmul.f32 %v3301_v1, %v1267_v27  ;;  %v2140_v7 = vclamps-f32 %v1239_v17, 1.0  ;;  %v1637_v15 = vunpack.c.l.bf16 %v1291_v2 }
 0x422   : > { %v1269_v42 = vadd.f32 %v3301_v1, %v1268_v55  ;;  %v1284_v50 = vadd.f32 1.0, %v2140_v7 }
 0x424   : > { %v1273_v59 = vsel %vm1272_vm9, %v3301_v1, %v1269_v42  ;;  %v1288_v26 = vmul.f32 %v1284_v50, %v1116_v13 }
 0x425   : > { %v1278_v60 = vsel %vm1275_vm10, %v1277_v41, %v1273_v59  ;;  %v2401_v59 = vld [vmem:[#allocation12 + $0x8] sm:$0xff]  ;;  %v2402_v41 = vld [vmem:[#allocation12 + $0x10] sm:$0xff] }
 0x426   : > { %v1279_v22 = vmul.f32 %v1278_v60, %v1254_v48  ;;  %v1292_v29 = vpack.c.bf16 %v1288_v26, %v1288_v26  ;;  %v2403_v60 = vld [vmem:[#allocation12 + $0x18] sm:$0xff] }
 0x428   : > { %v2141_v49 = vclamps-f32 %v1279_v22, 1.0  ;;  %v1666_v35 = vunpack.c.l.bf16 %v1292_v29 }
 0x42a   : > { %v1285_v19 = vadd.f32 1.0, %v2141_v49 }
 0x42c   : > { %v1289_v34 = vmul.f32 %v1285_v19, %v1117_v25 }
 0x42e   : > { %v1293_v32 = vpack.c.bf16 %v1289_v34, %v1289_v34 }
 0x430   : > { %v1667_v28 = vunpack.c.l.bf16 %v1293_v32 }
 0x46a   : > { %v1627_v62 = vpop.f32.mrf.mxu2 }
 0x46b   : > { %v1628_v51 = vadd.f32 %v1627_v62, %v1596_v45 }
 0x46d   : > { %v1632_v4 = vpack.c.bf16 %v1628_v51, %v1628_v51 }
 0x46f   : > { %v1634_v9 = vunpack.c.l.bf16 %v1632_v4 }
 0x471   : > { %v1638_v21 = vmul.f32 %v1636_v43, %v1634_v9 }
 0x472   : > { %v1629_v1 = vpop.f32.mrf.mxu2 }
 0x473   : > { %v1630_v12 = vadd.f32 %v1629_v1, %v1601_v8  ;;  %v1640_v61 = vpack.c.bf16 %v1638_v21, %v1638_v21 }
 0x475   : > { %v1633_v10 = vpack.c.bf16 %v1630_v12, %v1630_v12  ;;  %v1674_v31 = vunpack.c.l.b16 %v1640_v61 }
 0x477   : > { %v1635_v14 = vunpack.c.l.bf16 %v1633_v10 }
 0x479   : > { %v1639_v24 = vmul.f32 %v1637_v15, %v1635_v14 }
 0x47a   : > { %v1657_v18 = vpop.f32.mrf.mxu3 }
 0x47b   : > { %v1658_v20 = vadd.f32 %v1657_v18, %v1596_v45  ;;  %v1641_v30 = vpack.c.bf16 %v1639_v24, %v1639_v24 }
 0x47d   : > { %v1662_v27 = vpack.c.bf16 %v1658_v20, %v1658_v20  ;;  %v1675_v11 = vunpack.c.l.b16 %v1641_v30 }
 0x47f   : > { %v1664_v40 = vunpack.c.l.bf16 %v1662_v27  ;;  %v1676_v37 = vpack.c.b16 %v1675_v11, %v1674_v31 }
 0x481   : > { %1760 = vmatmul.bf16.vlgmr.msrb.gmra.mxu2 %v1676_v37  ;;  %v1668_v38 = vmul.f32 %v1666_v35, %v1664_v40 }
 0x482   : > { %v1659_v55 = vpop.f32.mrf.mxu3 }
 0x483   : > { %v1660_v46 = vadd.f32 %v1659_v55, %v1601_v8  ;;  %v1670_v44 = vpack.c.bf16 %v1668_v38, %v1668_v38 }
 0x485   : > { %v1663_v33 = vpack.c.bf16 %v1660_v46, %v1660_v46  ;;  %v1680_v47 = vunpack.c.l.b16 %v1670_v44 }
 0x487   : > { %v1665_v16 = vunpack.c.l.bf16 %v1663_v33 }
 0x489   : > { %v1669_v23 = vmul.f32 %v1667_v28, %v1665_v16 }
 0x48b   : > { %v1671_v42 = vpack.c.bf16 %v1669_v23, %v1669_v23 }
 0x48d   : > { %v1681_v52 = vunpack.c.l.b16 %v1671_v42 }
 0x48f   : > { %v1682_v53 = vpack.c.b16 %v1681_v52, %v1680_v47 }
 0x491   : > { %1765 = vmatmul.bf16.vlgmr.msrb.gmra.mxu3 %v1682_v53 }
 0x504   : > { %v1761_v58 = vpop.f32.mrf.mxu2 }
 0x505   : > { %v1762_v45 = vadd.f32 %v2363_v54, %v1761_v58 }
 0x507   : > { %v1771_v56 = vadd.f32 %v2400_v39, %v1762_v45 }
 0x509   : > { %1775 = vst [vmem:[#allocation12] sm:$0xff] %v1771_v56 }
 0x50c   : > { %v1763_v36 = vpop.f32.mrf.mxu2 }
 0x50d   : > { %v1764_v57 = vadd.f32 %v2363_v54, %v1763_v36 }
 0x50f   : > { %v1772_v62 = vadd.f32 %v2401_v59, %v1764_v57 }
 0x511   : > { %1776 = vst [vmem:[#allocation12 + $0x8] sm:$0xff] %v1772_v62 }
 0x514   : > { %v1766_v63 = vpop.f32.mrf.mxu3 }
 0x515   : > { %v1767_v0 = vadd.f32 %v2363_v54, %v1766_v63 }
 0x517   : > { %v1773_v51 = vadd.f32 %v2402_v41, %v1767_v0 }
 0x519   : > { %1777 = vst [vmem:[#allocation12 + $0x10] sm:$0xff] %v1773_v51 }
 0x51c   : > { %v1768_v17 = vpop.f32.mrf.mxu3 }
 0x51d   : > { %v1769_v3 = vadd.f32 %v2363_v54, %v1768_v17 }
 0x51f   : > { %v1774_v4 = vadd.f32 %v2403_v60, %v1769_v3 }
 0x521   : > { %1778 = vst [vmem:[#allocation12 + $0x18] sm:$0xff] %v1774_v4 }
 0x522   : > { %2262 = dma.vmem_to_hbm [thread:$0]  (%p2293_p3), %s1789_s30, 512, %s1791_s19, [#allocation4], %s2716_s4, %s2716_s4, %s2717_s15  }
 0x523   : > { %2679 = dma.done.wait (%p2293_p3), [#allocation4], 512  }
 0x524   : > { %2681 = vsyncadd (%p2293_p3), [#allocation4], 4294966784 }
 0x525 PF: > { %s3431_s10 = sld [smem:[#allocation17_spill]]  ;;  %s3434_s25 = smov %s2688_s26 }
 0x526   : > { %s3432_s1 = sld [smem:[#allocation19_spill]]  ;;  %s3435_s26 = smov %s2692_s27 }
 0x527   : > { %s3433_s12 = sld [smem:[#allocation18_spill]]  ;;  %s3437_s28 = smov %s2700_s29 }
 0x52b   : > { %s26_s30 = sadd.s32 1, %s3431_s10  }
 0x52c   : > { %p23_p4 = scmp.ge.s32.totalorder %s26_s30, 4   ;;  %s3436_s27 = smov %s3432_s1 }
 0x52d   : > { %s3438_s29 = smov %s3433_s12 }
 0x52e   :  { %25 = sbr.rel (!%p23_p4) target bundleno = 16 (0x10), region = 183 }
 0x533   :  { %1807 = vsyncpa [#allocation3], 1 }
 0x534   :  { %1809 = vsyncpa [#allocation3 + $0x1], 1 }
 0x535   :  { %1810 = vsyncpa [#allocation6], 1 }
 0x536   :  { %1811 = vsyncpa [#allocation4], 1 }
 0x537   :  { %1813 = vsyncpa [#allocation4 + $0x1], 1 }

</bundles_post_ra>
